<compile_context>
chip_gen: v7x
topology: tpu7x:2x2x1
jax: 0.10.0
libtpu: 0.0.40
codegen_flags: <defaults>
</compile_context>

<pallas_src>
import math
import jax
import jax.numpy as jnp
from jax import lax
from jax.experimental import pallas as pl
from jax.experimental.pallas import tpu as pltpu

# ---------------- small config (consistent with the module's __init__) -------
VOCAB = 256          # vocab_size
D = 128              # embedding_dim
N_HEADS = 4          # num_attention_heads
N_KV_HEADS = 4       # num_key_value_heads (== N_HEADS so rope_q/rope_k match)
HEAD_DIM = D // N_HEADS            # 32
FFN_HIDDEN = 256     # SwiGLU hidden dim
N_LAYERS = 2         # num_layers
SEQ = 8
BATCH = 2
EPS = 1e-5           # rms_norm_eps
PAD_IDX = 0          # padding_idx
ROPE_THETA = 10000.0
NEG_INF = -1e30


# ---------------- in-kernel helpers ------------------------------------------
def _rmsnorm(x, w, eps=EPS):
    ms = jnp.mean(x * x, axis=-1, keepdims=True)
    return x * lax.rsqrt(ms + eps) * w


def _swap_halves(x):
    # rotate-half without the negation (sign is folded into the sin table)
    h = x.shape[-1] // 2
    return jnp.concatenate([x[:, h:], x[:, :h]], axis=-1)


# ---------------- whole-model fused kernel -----------------------------------
def transformer_kernel(x_ref, anorm_ref, wqkv_ref, wo_ref, fnorm_ref,
                       w13_ref, w2_ref, cos_q_ref, sin_q_ref,
                       cos_k_ref, sin_k_ref, mask_ref,
                       final_norm_ref, emb_ref, out_ref):
    f32 = jnp.float32
    bf16 = jnp.bfloat16

    x = x_ref[...]                       # (R, D) f32, R = B*S
    R = x.shape[0]
    cos_q = cos_q_ref[...]               # (H*R, HEAD_DIM) -- scale pre-folded
    sin_q = sin_q_ref[...]
    cos_k = cos_k_ref[...]
    sin_k = sin_k_ref[...]
    mask = mask_ref[...]                 # (H*R, H*R) additive block-causal mask

    def fold(t, base):
        # (R, H*HEAD_DIM) lane groups -> (H*R, HEAD_DIM) rows (head-major)
        return jnp.concatenate(
            [t[:, base + h * HEAD_DIM: base + (h + 1) * HEAD_DIM]
             for h in range(N_HEADS)], axis=0)

    def unfold(t):
        # (H*R, HEAD_DIM) -> (R, H*HEAD_DIM)
        return jnp.concatenate(
            [t[h * R:(h + 1) * R, :] for h in range(N_HEADS)], axis=1)

    for l in range(N_LAYERS):            # statically unrolled layers
        # ---- attention sub-block ----
        xn = _rmsnorm(x, anorm_ref[l])
        qkv = jnp.dot(xn.astype(bf16), wqkv_ref[l],
                      preferred_element_type=f32)        # (R, 3D)
        q = fold(qkv, 0)                                  # (H*R, HEAD_DIM)
        k = fold(qkv, D)
        v = fold(qkv, 2 * D)
        q = q * cos_q + _swap_halves(q) * sin_q           # RoPE (+ 1/sqrt(hd))
        k = k * cos_k + _swap_halves(k) * sin_k

        scores = lax.dot_general(q.astype(bf16), k.astype(bf16),
                                 (((1,), (1,)), ((), ())),
                                 preferred_element_type=f32) + mask  # (H*R, H*R)
        m = jnp.max(scores, axis=-1, keepdims=True)
        p = jnp.exp(scores - m)
        denom = jnp.sum(p, axis=-1, keepdims=True)
        p = p * pl.reciprocal(denom, approx=True)
        ctx = jnp.dot(p.astype(bf16), v.astype(bf16),
                      preferred_element_type=f32)         # (H*R, HEAD_DIM)
        attn = jnp.dot(unfold(ctx).astype(bf16), wo_ref[l],
                       preferred_element_type=f32)        # (R, D)
        h1 = x + attn

        # ---- SwiGLU feed-forward sub-block ----
        hn = _rmsnorm(h1, fnorm_ref[l])
        gu = jnp.dot(hn.astype(bf16), w13_ref[l],
                     preferred_element_type=f32)          # (R, 2*FFN)
        g = gu[:, :FFN_HIDDEN]
        u = gu[:, FFN_HIDDEN:]
        ffn = jnp.dot((jax.nn.silu(g) * u).astype(bf16), w2_ref[l],
                      preferred_element_type=f32)         # (R, D)
        x = h1 + ffn

    # ---- final RMSNorm + tied output projection (all rows; last row picked
    #      outside -- lane-dense (R, V) output) ----
    xf = _rmsnorm(x, final_norm_ref[...])
    out_ref[...] = lax.dot_general(xf.astype(bf16), emb_ref[...],
                                   (((1,), (1,)), ((), ())),
                                   preferred_element_type=f32)


# ---------------- host-side precomputed tables --------------------------------
def rope_tables(seq_len, head_dim):
    inv_freq = 1.0 / (ROPE_THETA ** (jnp.arange(0, head_dim, 2,
                                                 dtype=jnp.float32) / head_dim))
    t = jnp.arange(seq_len, dtype=jnp.float32)
    freqs = jnp.outer(t, inv_freq)                 # (S, head_dim // 2)
    emb = jnp.concatenate([freqs, freqs], axis=-1) # (S, head_dim)
    cos = jnp.cos(emb)
    sin = jnp.sin(emb)
    h = head_dim // 2
    # fold the rotate-half negation into the sin table
    sin_signed = jnp.concatenate([-sin[:, :h], sin[:, h:]], axis=-1)
    return cos, sin_signed


def build_attn_mask(batch, seq, heads):
    n = heads * batch * seq
    idx = jnp.arange(n)
    blk = idx // seq                     # (head, batch) block id
    pos = idx % seq                      # position within sequence
    valid = (blk[:, None] == blk[None, :]) & (pos[:, None] >= pos[None, :])
    return jnp.where(valid, 0.0, NEG_INF).astype(jnp.float32)


# ---------------- parameters (deterministic init, mirrors _init_weights) ------
def init_params(key):
    n_per_layer = 7
    keys = jax.random.split(key, 1 + N_LAYERS * n_per_layer)
    kit = iter(keys)

    def normal(k, shape, std):
        return std * jax.random.normal(k, shape, dtype=jnp.float32)

    emb = normal(next(kit), (VOCAB, D), 0.02)
    emb = emb.at[PAD_IDX].set(0.0)                 # padding_idx row zeroed

    wo_std = 0.02 / math.sqrt(2 * N_LAYERS)        # special init for wo.weight
    wqkv, wo, w13, w2 = [], [], [], []
    for _ in range(N_LAYERS):
        wq = normal(next(kit), (D, D), 0.02)
        wk = normal(next(kit), (D, D), 0.02)
        wv = normal(next(kit), (D, D), 0.02)
        wqkv.append(jnp.concatenate([wq, wk, wv], axis=-1))   # (D, 3D)
        wo.append(normal(next(kit), (D, D), wo_std))
        w1 = normal(next(kit), (D, FFN_HIDDEN), 0.02)
        w3 = normal(next(kit), (D, FFN_HIDDEN), 0.02)
        w13.append(jnp.concatenate([w1, w3], axis=-1))        # (D, 2*FFN)
        w2.append(normal(next(kit), (FFN_HIDDEN, D), 0.02))

    return dict(
        emb=emb,                                              # f32 (tied head)
        attn_norm=jnp.ones((N_LAYERS, 1, D), jnp.float32),
        ffn_norm=jnp.ones((N_LAYERS, 1, D), jnp.float32),
        final_norm=jnp.ones((1, D), jnp.float32),
        wqkv=jnp.stack(wqkv).astype(jnp.bfloat16),            # (L, D, 3D)
        wo=jnp.stack(wo).astype(jnp.bfloat16),                # (L, D, D)
        w13=jnp.stack(w13).astype(jnp.bfloat16),              # (L, D, 2*FFN)
        w2=jnp.stack(w2).astype(jnp.bfloat16),                # (L, FFN, D)
    )


# ---------------- full forward (glue in plain JAX, hot path in one kernel) ----
@jax.jit
def transformer_forward(tokens, params):
    B, S = tokens.shape
    R = B * S
    x = params["emb"][tokens].reshape(R, D)        # token embedding gather (glue)
    # self.dropout: identity at inference (eval mode)

    cos, sin_signed = rope_tables(S, HEAD_DIM)
    rep = N_HEADS * B
    scale = 1.0 / math.sqrt(HEAD_DIM)
    cos_q = jnp.tile(cos * scale, (rep, 1))        # attention scale folded here
    sin_q = jnp.tile(sin_signed * scale, (rep, 1))
    cos_k = jnp.tile(cos, (rep, 1))
    sin_k = jnp.tile(sin_signed, (rep, 1))
    mask = build_attn_mask(B, S, N_HEADS)

    vmem = pl.BlockSpec(memory_space=pltpu.MemorySpace.VMEM)
    logits_full = pl.pallas_call(
        transformer_kernel,
        out_shape=jax.ShapeDtypeStruct((R, VOCAB), jnp.float32),
        in_specs=[vmem] * 14,
        out_specs=vmem,
    )(x, params["attn_norm"], params["wqkv"], params["wo"],
      params["ffn_norm"], params["w13"], params["w2"],
      cos_q, sin_q, cos_k, sin_k, mask,
      params["final_norm"], params["emb"].astype(jnp.bfloat16))

    logits = logits_full.reshape(B, S, VOCAB)[:, -1:, :]   # output(x[:, [-1], :])
    return logits, None
    # TODO(synk): targets/cross-entropy training branch not implemented (inference path only).


if __name__ == "__main__":
    key = jax.random.PRNGKey(0)
    k_tok, k_par = jax.random.split(key)
    tokens = jax.random.randint(k_tok, (BATCH, SEQ), 0, VOCAB, dtype=jnp.int32)
    params = init_params(k_par)

    logits, loss = transformer_forward(tokens, params)
    logits = jax.block_until_ready(logits)
    assert logits.shape == (BATCH, 1, VOCAB)
    assert loss is None
    assert bool(jnp.all(jnp.isfinite(logits)))
    print("KERNEL_OK")
</pallas_src>

<mosaic_0001>
module attributes {stable_mosaic.version = 11 : i64} {
  func.func @transformer_kernel(%arg0: memref<16x128xf32, #tpu.memory_space<vmem>>, %arg1: memref<2x1x128xf32, #tpu.memory_space<vmem>>, %arg2: memref<2x128x384xbf16, #tpu.memory_space<vmem>>, %arg3: memref<2x128x128xbf16, #tpu.memory_space<vmem>>, %arg4: memref<2x1x128xf32, #tpu.memory_space<vmem>>, %arg5: memref<2x128x512xbf16, #tpu.memory_space<vmem>>, %arg6: memref<2x256x128xbf16, #tpu.memory_space<vmem>>, %arg7: memref<64x32xf32, #tpu.memory_space<vmem>>, %arg8: memref<64x32xf32, #tpu.memory_space<vmem>>, %arg9: memref<64x32xf32, #tpu.memory_space<vmem>>, %arg10: memref<64x32xf32, #tpu.memory_space<vmem>>, %arg11: memref<64x64xf32, #tpu.memory_space<vmem>>, %arg12: memref<1x128xf32, #tpu.memory_space<vmem>>, %arg13: memref<256x128xbf16, #tpu.memory_space<vmem>>, %arg14: memref<16x256xf32, #tpu.memory_space<vmem>>) attributes {dimension_semantics = [], scalar_prefetch = 0 : i64, scratch_operands = 0 : i64, tpu.core_type = #tpu.core_type<tc>} {
    %c0 = arith.constant 0 : index
    %c0_0 = arith.constant 0 : index
    %0 = vector.load %arg0[%c0, %c0_0] : memref<16x128xf32, #tpu.memory_space<vmem>>, vector<16x128xf32>
    %c0_1 = arith.constant 0 : index
    %c0_2 = arith.constant 0 : index
    %1 = vector.load %arg7[%c0_1, %c0_2] : memref<64x32xf32, #tpu.memory_space<vmem>>, vector<64x32xf32>
    %c0_3 = arith.constant 0 : index
    %c0_4 = arith.constant 0 : index
    %2 = vector.load %arg8[%c0_3, %c0_4] : memref<64x32xf32, #tpu.memory_space<vmem>>, vector<64x32xf32>
    %c0_5 = arith.constant 0 : index
    %c0_6 = arith.constant 0 : index
    %3 = vector.load %arg9[%c0_5, %c0_6] : memref<64x32xf32, #tpu.memory_space<vmem>>, vector<64x32xf32>
    %c0_7 = arith.constant 0 : index
    %c0_8 = arith.constant 0 : index
    %4 = vector.load %arg10[%c0_7, %c0_8] : memref<64x32xf32, #tpu.memory_space<vmem>>, vector<64x32xf32>
    %c0_9 = arith.constant 0 : index
    %c0_10 = arith.constant 0 : index
    %5 = vector.load %arg11[%c0_9, %c0_10] : memref<64x64xf32, #tpu.memory_space<vmem>>, vector<64x64xf32>
    %c0_11 = arith.constant 0 : index
    %c0_12 = arith.constant 0 : index
    %c0_13 = arith.constant 0 : index
    %6 = vector.load %arg1[%c0_11, %c0_12, %c0_13] : memref<2x1x128xf32, #tpu.memory_space<vmem>>, vector<1x1x128xf32>
    %7 = vector.shape_cast %6 : vector<1x1x128xf32> to vector<1x128xf32>
    %8 = arith.mulf %0, %0 : vector<16x128xf32>
    %cst = arith.constant dense<0.000000e+00> : vector<16xf32>
    %9 = vector.multi_reduction <add>, %8, %cst [1] : vector<16x128xf32> to vector<16xf32>
    %10 = vector.shape_cast %9 : vector<16xf32> to vector<16x1xf32>
    %cst_14 = arith.constant 1.280000e+02 : f32
    %11 = vector.broadcast %cst_14 : f32 to vector<16x1xf32>
    %12 = arith.divf %10, %11 : vector<16x1xf32>
    %cst_15 = arith.constant 9.99999974E-6 : f32
    %13 = vector.broadcast %cst_15 : f32 to vector<16x1xf32>
    %14 = arith.addf %12, %13 : vector<16x1xf32>
    %15 = math.rsqrt %14 : vector<16x1xf32>
    %16 = vector.broadcast %15 : vector<16x1xf32> to vector<16x128xf32>
    %17 = arith.mulf %0, %16 : vector<16x128xf32>
    %18 = vector.broadcast %7 : vector<1x128xf32> to vector<16x128xf32>
    %19 = arith.mulf %17, %18 : vector<16x128xf32>
    %20 = arith.truncf %19 : vector<16x128xf32> to vector<16x128xbf16>
    %c0_16 = arith.constant 0 : index
    %c0_17 = arith.constant 0 : index
    %c0_18 = arith.constant 0 : index
    %21 = vector.load %arg2[%c0_16, %c0_17, %c0_18] : memref<2x128x384xbf16, #tpu.memory_space<vmem>>, vector<1x128x384xbf16>
    %22 = vector.shape_cast %21 : vector<1x128x384xbf16> to vector<128x384xbf16>
    %cst_19 = arith.constant dense<0.000000e+00> : vector<16x384xf32>
    %23 = tpu.matmul %20, %22, %cst_19 {dimension_numbers = #tpu.dot_dimension_numbers<[1], [0], [0], [1], [0, 0, 1, 1], [], []>} : vector<16x128xbf16>, vector<128x384xbf16>, vector<16x384xf32> -> vector<16x384xf32>
    %24 = vector.extract_strided_slice %23 {offsets = [0, 0], sizes = [16, 32], strides = [1, 1]} : vector<16x384xf32> to vector<16x32xf32>
    %25 = vector.extract_strided_slice %23 {offsets = [0, 32], sizes = [16, 32], strides = [1, 1]} : vector<16x384xf32> to vector<16x32xf32>
    %26 = vector.extract_strided_slice %23 {offsets = [0, 64], sizes = [16, 32], strides = [1, 1]} : vector<16x384xf32> to vector<16x32xf32>
    %27 = vector.extract_strided_slice %23 {offsets = [0, 96], sizes = [16, 32], strides = [1, 1]} : vector<16x384xf32> to vector<16x32xf32>
    %28 = tpu.concatenate %24, %25, %26, %27 in 0 : vector<16x32xf32>, vector<16x32xf32>, vector<16x32xf32>, vector<16x32xf32> -> vector<64x32xf32>
    %29 = vector.extract_strided_slice %23 {offsets = [0, 128], sizes = [16, 32], strides = [1, 1]} : vector<16x384xf32> to vector<16x32xf32>
    %30 = vector.extract_strided_slice %23 {offsets = [0, 160], sizes = [16, 32], strides = [1, 1]} : vector<16x384xf32> to vector<16x32xf32>
    %31 = vector.extract_strided_slice %23 {offsets = [0, 192], sizes = [16, 32], strides = [1, 1]} : vector<16x384xf32> to vector<16x32xf32>
    %32 = vector.extract_strided_slice %23 {offsets = [0, 224], sizes = [16, 32], strides = [1, 1]} : vector<16x384xf32> to vector<16x32xf32>
    %33 = tpu.concatenate %29, %30, %31, %32 in 0 : vector<16x32xf32>, vector<16x32xf32>, vector<16x32xf32>, vector<16x32xf32> -> vector<64x32xf32>
    %34 = vector.extract_strided_slice %23 {offsets = [0, 256], sizes = [16, 32], strides = [1, 1]} : vector<16x384xf32> to vector<16x32xf32>
    %35 = vector.extract_strided_slice %23 {offsets = [0, 288], sizes = [16, 32], strides = [1, 1]} : vector<16x384xf32> to vector<16x32xf32>
    %36 = vector.extract_strided_slice %23 {offsets = [0, 320], sizes = [16, 32], strides = [1, 1]} : vector<16x384xf32> to vector<16x32xf32>
    %37 = vector.extract_strided_slice %23 {offsets = [0, 352], sizes = [16, 32], strides = [1, 1]} : vector<16x384xf32> to vector<16x32xf32>
    %38 = tpu.concatenate %34, %35, %36, %37 in 0 : vector<16x32xf32>, vector<16x32xf32>, vector<16x32xf32>, vector<16x32xf32> -> vector<64x32xf32>
    %39 = arith.mulf %28, %1 : vector<64x32xf32>
    %40 = vector.extract_strided_slice %28 {offsets = [0, 16], sizes = [64, 16], strides = [1, 1]} : vector<64x32xf32> to vector<64x16xf32>
    %41 = vector.extract_strided_slice %28 {offsets = [0, 0], sizes = [64, 16], strides = [1, 1]} : vector<64x32xf32> to vector<64x16xf32>
    %42 = tpu.concatenate %40, %41 in 1 : vector<64x16xf32>, vector<64x16xf32> -> vector<64x32xf32>
    %43 = arith.mulf %42, %2 : vector<64x32xf32>
    %44 = arith.addf %39, %43 : vector<64x32xf32>
    %45 = arith.mulf %33, %3 : vector<64x32xf32>
    %46 = vector.extract_strided_slice %33 {offsets = [0, 16], sizes = [64, 16], strides = [1, 1]} : vector<64x32xf32> to vector<64x16xf32>
    %47 = vector.extract_strided_slice %33 {offsets = [0, 0], sizes = [64, 16], strides = [1, 1]} : vector<64x32xf32> to vector<64x16xf32>
    %48 = tpu.concatenate %46, %47 in 1 : vector<64x16xf32>, vector<64x16xf32> -> vector<64x32xf32>
    %49 = arith.mulf %48, %4 : vector<64x32xf32>
    %50 = arith.addf %45, %49 : vector<64x32xf32>
    %51 = arith.truncf %44 : vector<64x32xf32> to vector<64x32xbf16>
    %52 = arith.truncf %50 : vector<64x32xf32> to vector<64x32xbf16>
    %cst_20 = arith.constant dense<0.000000e+00> : vector<64x64xf32>
    %53 = tpu.matmul %51, %52, %cst_20 {dimension_numbers = #tpu.dot_dimension_numbers<[1], [1], [0], [0], [0, 0, 1, 0], [], []>} : vector<64x32xbf16>, vector<64x32xbf16>, vector<64x64xf32> -> vector<64x64xf32>
    %54 = arith.addf %53, %5 : vector<64x64xf32>
    %cst_21 = arith.constant dense<0xFF800000> : vector<64xf32>
    %55 = vector.multi_reduction <maximumf>, %54, %cst_21 [1] : vector<64x64xf32> to vector<64xf32>
    %56 = vector.shape_cast %55 : vector<64xf32> to vector<64x1xf32>
    %57 = vector.broadcast %56 : vector<64x1xf32> to vector<64x64xf32>
    %58 = arith.subf %54, %57 : vector<64x64xf32>
    %59 = math.exp %58 : vector<64x64xf32>
    %cst_22 = arith.constant dense<0.000000e+00> : vector<64xf32>
    %60 = vector.multi_reduction <add>, %59, %cst_22 [1] : vector<64x64xf32> to vector<64xf32>
    %61 = vector.shape_cast %60 : vector<64xf32> to vector<64x1xf32>
    %62 = tpu.reciprocal %61 {approx = true} : vector<64x1xf32> -> vector<64x1xf32>
    %63 = vector.broadcast %62 : vector<64x1xf32> to vector<64x64xf32>
    %64 = arith.mulf %59, %63 : vector<64x64xf32>
    %65 = arith.truncf %64 : vector<64x64xf32> to vector<64x64xbf16>
    %66 = arith.truncf %38 : vector<64x32xf32> to vector<64x32xbf16>
    %cst_23 = arith.constant dense<0.000000e+00> : vector<64x32xf32>
    %67 = tpu.matmul %65, %66, %cst_23 {dimension_numbers = #tpu.dot_dimension_numbers<[1], [0], [0], [1], [0, 0, 1, 1], [], []>} : vector<64x64xbf16>, vector<64x32xbf16>, vector<64x32xf32> -> vector<64x32xf32>
    %68 = vector.extract_strided_slice %67 {offsets = [0, 0], sizes = [16, 32], strides = [1, 1]} : vector<64x32xf32> to vector<16x32xf32>
    %69 = vector.extract_strided_slice %67 {offsets = [16, 0], sizes = [16, 32], strides = [1, 1]} : vector<64x32xf32> to vector<16x32xf32>
    %70 = vector.extract_strided_slice %67 {offsets = [32, 0], sizes = [16, 32], strides = [1, 1]} : vector<64x32xf32> to vector<16x32xf32>
    %71 = vector.extract_strided_slice %67 {offsets = [48, 0], sizes = [16, 32], strides = [1, 1]} : vector<64x32xf32> to vector<16x32xf32>
    %72 = tpu.concatenate %68, %69, %70, %71 in 1 : vector<16x32xf32>, vector<16x32xf32>, vector<16x32xf32>, vector<16x32xf32> -> vector<16x128xf32>
    %73 = arith.truncf %72 : vector<16x128xf32> to vector<16x128xbf16>
    %c0_24 = arith.constant 0 : index
    %c0_25 = arith.constant 0 : index
    %c0_26 = arith.constant 0 : index
    %74 = vector.load %arg3[%c0_24, %c0_25, %c0_26] : memref<2x128x128xbf16, #tpu.memory_space<vmem>>, vector<1x128x128xbf16>
    %75 = vector.shape_cast %74 : vector<1x128x128xbf16> to vector<128x128xbf16>
    %cst_27 = arith.constant dense<0.000000e+00> : vector<16x128xf32>
    %76 = tpu.matmul %73, %75, %cst_27 {dimension_numbers = #tpu.dot_dimension_numbers<[1], [0], [0], [1], [0, 0, 1, 1], [], []>} : vector<16x128xbf16>, vector<128x128xbf16>, vector<16x128xf32> -> vector<16x128xf32>
    %77 = arith.addf %0, %76 : vector<16x128xf32>
    %c0_28 = arith.constant 0 : index
    %c0_29 = arith.constant 0 : index
    %c0_30 = arith.constant 0 : index
    %78 = vector.load %arg4[%c0_28, %c0_29, %c0_30] : memref<2x1x128xf32, #tpu.memory_space<vmem>>, vector<1x1x128xf32>
    %79 = vector.shape_cast %78 : vector<1x1x128xf32> to vector<1x128xf32>
    %80 = arith.mulf %77, %77 : vector<16x128xf32>
    %cst_31 = arith.constant dense<0.000000e+00> : vector<16xf32>
    %81 = vector.multi_reduction <add>, %80, %cst_31 [1] : vector<16x128xf32> to vector<16xf32>
    %82 = vector.shape_cast %81 : vector<16xf32> to vector<16x1xf32>
    %cst_32 = arith.constant 1.280000e+02 : f32
    %83 = vector.broadcast %cst_32 : f32 to vector<16x1xf32>
    %84 = arith.divf %82, %83 : vector<16x1xf32>
    %cst_33 = arith.constant 9.99999974E-6 : f32
    %85 = vector.broadcast %cst_33 : f32 to vector<16x1xf32>
    %86 = arith.addf %84, %85 : vector<16x1xf32>
    %87 = math.rsqrt %86 : vector<16x1xf32>
    %88 = vector.broadcast %87 : vector<16x1xf32> to vector<16x128xf32>
    %89 = arith.mulf %77, %88 : vector<16x128xf32>
    %90 = vector.broadcast %79 : vector<1x128xf32> to vector<16x128xf32>
    %91 = arith.mulf %89, %90 : vector<16x128xf32>
    %92 = arith.truncf %91 : vector<16x128xf32> to vector<16x128xbf16>
    %c0_34 = arith.constant 0 : index
    %c0_35 = arith.constant 0 : index
    %c0_36 = arith.constant 0 : index
    %93 = vector.load %arg5[%c0_34, %c0_35, %c0_36] : memref<2x128x512xbf16, #tpu.memory_space<vmem>>, vector<1x128x512xbf16>
    %94 = vector.shape_cast %93 : vector<1x128x512xbf16> to vector<128x512xbf16>
    %cst_37 = arith.constant dense<0.000000e+00> : vector<16x512xf32>
    %95 = tpu.matmul %92, %94, %cst_37 {dimension_numbers = #tpu.dot_dimension_numbers<[1], [0], [0], [1], [0, 0, 1, 1], [], []>} : vector<16x128xbf16>, vector<128x512xbf16>, vector<16x512xf32> -> vector<16x512xf32>
    %96 = vector.extract_strided_slice %95 {offsets = [0, 0], sizes = [16, 256], strides = [1, 1]} : vector<16x512xf32> to vector<16x256xf32>
    %97 = vector.extract_strided_slice %95 {offsets = [0, 256], sizes = [16, 256], strides = [1, 1]} : vector<16x512xf32> to vector<16x256xf32>
    %98 = arith.negf %96 : vector<16x256xf32>
    %99 = math.exp %98 : vector<16x256xf32>
    %cst_38 = arith.constant 1.000000e+00 : f32
    %100 = vector.broadcast %cst_38 : f32 to vector<16x256xf32>
    %101 = arith.addf %100, %99 : vector<16x256xf32>
    %102 = arith.divf %100, %101 : vector<16x256xf32>
    %103 = arith.mulf %96, %102 : vector<16x256xf32>
    %104 = arith.mulf %103, %97 : vector<16x256xf32>
    %105 = arith.truncf %104 : vector<16x256xf32> to vector<16x256xbf16>
    %c0_39 = arith.constant 0 : index
    %c0_40 = arith.constant 0 : index
    %c0_41 = arith.constant 0 : index
    %106 = vector.load %arg6[%c0_39, %c0_40, %c0_41] : memref<2x256x128xbf16, #tpu.memory_space<vmem>>, vector<1x256x128xbf16>
    %107 = vector.shape_cast %106 : vector<1x256x128xbf16> to vector<256x128xbf16>
    %cst_42 = arith.constant dense<0.000000e+00> : vector<16x128xf32>
    %108 = tpu.matmul %105, %107, %cst_42 {dimension_numbers = #tpu.dot_dimension_numbers<[1], [0], [0], [1], [0, 0, 1, 1], [], []>} : vector<16x256xbf16>, vector<256x128xbf16>, vector<16x128xf32> -> vector<16x128xf32>
    %109 = arith.addf %77, %108 : vector<16x128xf32>
    %c1 = arith.constant 1 : index
    %c0_43 = arith.constant 0 : index
    %c0_44 = arith.constant 0 : index
    %110 = vector.load %arg1[%c1, %c0_43, %c0_44] : memref<2x1x128xf32, #tpu.memory_space<vmem>>, vector<1x1x128xf32>
    %111 = vector.shape_cast %110 : vector<1x1x128xf32> to vector<1x128xf32>
    %112 = arith.mulf %109, %109 : vector<16x128xf32>
    %cst_45 = arith.constant dense<0.000000e+00> : vector<16xf32>
    %113 = vector.multi_reduction <add>, %112, %cst_45 [1] : vector<16x128xf32> to vector<16xf32>
    %114 = vector.shape_cast %113 : vector<16xf32> to vector<16x1xf32>
    %cst_46 = arith.constant 1.280000e+02 : f32
    %115 = vector.broadcast %cst_46 : f32 to vector<16x1xf32>
    %116 = arith.divf %114, %115 : vector<16x1xf32>
    %cst_47 = arith.constant 9.99999974E-6 : f32
    %117 = vector.broadcast %cst_47 : f32 to vector<16x1xf32>
    %118 = arith.addf %116, %117 : vector<16x1xf32>
    %119 = math.rsqrt %118 : vector<16x1xf32>
    %120 = vector.broadcast %119 : vector<16x1xf32> to vector<16x128xf32>
    %121 = arith.mulf %109, %120 : vector<16x128xf32>
    %122 = vector.broadcast %111 : vector<1x128xf32> to vector<16x128xf32>
    %123 = arith.mulf %121, %122 : vector<16x128xf32>
    %124 = arith.truncf %123 : vector<16x128xf32> to vector<16x128xbf16>
    %c1_48 = arith.constant 1 : index
    %c0_49 = arith.constant 0 : index
    %c0_50 = arith.constant 0 : index
    %125 = vector.load %arg2[%c1_48, %c0_49, %c0_50] : memref<2x128x384xbf16, #tpu.memory_space<vmem>>, vector<1x128x384xbf16>
    %126 = vector.shape_cast %125 : vector<1x128x384xbf16> to vector<128x384xbf16>
    %cst_51 = arith.constant dense<0.000000e+00> : vector<16x384xf32>
    %127 = tpu.matmul %124, %126, %cst_51 {dimension_numbers = #tpu.dot_dimension_numbers<[1], [0], [0], [1], [0, 0, 1, 1], [], []>} : vector<16x128xbf16>, vector<128x384xbf16>, vector<16x384xf32> -> vector<16x384xf32>
    %128 = vector.extract_strided_slice %127 {offsets = [0, 0], sizes = [16, 32], strides = [1, 1]} : vector<16x384xf32> to vector<16x32xf32>
    %129 = vector.extract_strided_slice %127 {offsets = [0, 32], sizes = [16, 32], strides = [1, 1]} : vector<16x384xf32> to vector<16x32xf32>
    %130 = vector.extract_strided_slice %127 {offsets = [0, 64], sizes = [16, 32], strides = [1, 1]} : vector<16x384xf32> to vector<16x32xf32>
    %131 = vector.extract_strided_slice %127 {offsets = [0, 96], sizes = [16, 32], strides = [1, 1]} : vector<16x384xf32> to vector<16x32xf32>
    %132 = tpu.concatenate %128, %129, %130, %131 in 0 : vector<16x32xf32>, vector<16x32xf32>, vector<16x32xf32>, vector<16x32xf32> -> vector<64x32xf32>
    %133 = vector.extract_strided_slice %127 {offsets = [0, 128], sizes = [16, 32], strides = [1, 1]} : vector<16x384xf32> to vector<16x32xf32>
    %134 = vector.extract_strided_slice %127 {offsets = [0, 160], sizes = [16, 32], strides = [1, 1]} : vector<16x384xf32> to vector<16x32xf32>
    %135 = vector.extract_strided_slice %127 {offsets = [0, 192], sizes = [16, 32], strides = [1, 1]} : vector<16x384xf32> to vector<16x32xf32>
    %136 = vector.extract_strided_slice %127 {offsets = [0, 224], sizes = [16, 32], strides = [1, 1]} : vector<16x384xf32> to vector<16x32xf32>
    %137 = tpu.concatenate %133, %134, %135, %136 in 0 : vector<16x32xf32>, vector<16x32xf32>, vector<16x32xf32>, vector<16x32xf32> -> vector<64x32xf32>
    %138 = vector.extract_strided_slice %127 {offsets = [0, 256], sizes = [16, 32], strides = [1, 1]} : vector<16x384xf32> to vector<16x32xf32>
    %139 = vector.extract_strided_slice %127 {offsets = [0, 288], sizes = [16, 32], strides = [1, 1]} : vector<16x384xf32> to vector<16x32xf32>
    %140 = vector.extract_strided_slice %127 {offsets = [0, 320], sizes = [16, 32], strides = [1, 1]} : vector<16x384xf32> to vector<16x32xf32>
    %141 = vector.extract_strided_slice %127 {offsets = [0, 352], sizes = [16, 32], strides = [1, 1]} : vector<16x384xf32> to vector<16x32xf32>
    %142 = tpu.concatenate %138, %139, %140, %141 in 0 : vector<16x32xf32>, vector<16x32xf32>, vector<16x32xf32>, vector<16x32xf32> -> vector<64x32xf32>
    %143 = arith.mulf %132, %1 : vector<64x32xf32>
    %144 = vector.extract_strided_slice %132 {offsets = [0, 16], sizes = [64, 16], strides = [1, 1]} : vector<64x32xf32> to vector<64x16xf32>
    %145 = vector.extract_strided_slice %132 {offsets = [0, 0], sizes = [64, 16], strides = [1, 1]} : vector<64x32xf32> to vector<64x16xf32>
    %146 = tpu.concatenate %144, %145 in 1 : vector<64x16xf32>, vector<64x16xf32> -> vector<64x32xf32>
    %147 = arith.mulf %146, %2 : vector<64x32xf32>
    %148 = arith.addf %143, %147 : vector<64x32xf32>
    %149 = arith.mulf %137, %3 : vector<64x32xf32>
    %150 = vector.extract_strided_slice %137 {offsets = [0, 16], sizes = [64, 16], strides = [1, 1]} : vector<64x32xf32> to vector<64x16xf32>
    %151 = vector.extract_strided_slice %137 {offsets = [0, 0], sizes = [64, 16], strides = [1, 1]} : vector<64x32xf32> to vector<64x16xf32>
    %152 = tpu.concatenate %150, %151 in 1 : vector<64x16xf32>, vector<64x16xf32> -> vector<64x32xf32>
    %153 = arith.mulf %152, %4 : vector<64x32xf32>
    %154 = arith.addf %149, %153 : vector<64x32xf32>
    %155 = arith.truncf %148 : vector<64x32xf32> to vector<64x32xbf16>
    %156 = arith.truncf %154 : vector<64x32xf32> to vector<64x32xbf16>
    %cst_52 = arith.constant dense<0.000000e+00> : vector<64x64xf32>
    %157 = tpu.matmul %155, %156, %cst_52 {dimension_numbers = #tpu.dot_dimension_numbers<[1], [1], [0], [0], [0, 0, 1, 0], [], []>} : vector<64x32xbf16>, vector<64x32xbf16>, vector<64x64xf32> -> vector<64x64xf32>
    %158 = arith.addf %157, %5 : vector<64x64xf32>
    %cst_53 = arith.constant dense<0xFF800000> : vector<64xf32>
    %159 = vector.multi_reduction <maximumf>, %158, %cst_53 [1] : vector<64x64xf32> to vector<64xf32>
    %160 = vector.shape_cast %159 : vector<64xf32> to vector<64x1xf32>
    %161 = vector.broadcast %160 : vector<64x1xf32> to vector<64x64xf32>
    %162 = arith.subf %158, %161 : vector<64x64xf32>
    %163 = math.exp %162 : vector<64x64xf32>
    %cst_54 = arith.constant dense<0.000000e+00> : vector<64xf32>
    %164 = vector.multi_reduction <add>, %163, %cst_54 [1] : vector<64x64xf32> to vector<64xf32>
    %165 = vector.shape_cast %164 : vector<64xf32> to vector<64x1xf32>
    %166 = tpu.reciprocal %165 {approx = true} : vector<64x1xf32> -> vector<64x1xf32>
    %167 = vector.broadcast %166 : vector<64x1xf32> to vector<64x64xf32>
    %168 = arith.mulf %163, %167 : vector<64x64xf32>
    %169 = arith.truncf %168 : vector<64x64xf32> to vector<64x64xbf16>
    %170 = arith.truncf %142 : vector<64x32xf32> to vector<64x32xbf16>
    %cst_55 = arith.constant dense<0.000000e+00> : vector<64x32xf32>
    %171 = tpu.matmul %169, %170, %cst_55 {dimension_numbers = #tpu.dot_dimension_numbers<[1], [0], [0], [1], [0, 0, 1, 1], [], []>} : vector<64x64xbf16>, vector<64x32xbf16>, vector<64x32xf32> -> vector<64x32xf32>
    %172 = vector.extract_strided_slice %171 {offsets = [0, 0], sizes = [16, 32], strides = [1, 1]} : vector<64x32xf32> to vector<16x32xf32>
    %173 = vector.extract_strided_slice %171 {offsets = [16, 0], sizes = [16, 32], strides = [1, 1]} : vector<64x32xf32> to vector<16x32xf32>
    %174 = vector.extract_strided_slice %171 {offsets = [32, 0], sizes = [16, 32], strides = [1, 1]} : vector<64x32xf32> to vector<16x32xf32>
    %175 = vector.extract_strided_slice %171 {offsets = [48, 0], sizes = [16, 32], strides = [1, 1]} : vector<64x32xf32> to vector<16x32xf32>
    %176 = tpu.concatenate %172, %173, %174, %175 in 1 : vector<16x32xf32>, vector<16x32xf32>, vector<16x32xf32>, vector<16x32xf32> -> vector<16x128xf32>
    %177 = arith.truncf %176 : vector<16x128xf32> to vector<16x128xbf16>
    %c1_56 = arith.constant 1 : index
    %c0_57 = arith.constant 0 : index
    %c0_58 = arith.constant 0 : index
    %178 = vector.load %arg3[%c1_56, %c0_57, %c0_58] : memref<2x128x128xbf16, #tpu.memory_space<vmem>>, vector<1x128x128xbf16>
    %179 = vector.shape_cast %178 : vector<1x128x128xbf16> to vector<128x128xbf16>
    %cst_59 = arith.constant dense<0.000000e+00> : vector<16x128xf32>
    %180 = tpu.matmul %177, %179, %cst_59 {dimension_numbers = #tpu.dot_dimension_numbers<[1], [0], [0], [1], [0, 0, 1, 1], [], []>} : vector<16x128xbf16>, vector<128x128xbf16>, vector<16x128xf32> -> vector<16x128xf32>
    %181 = arith.addf %109, %180 : vector<16x128xf32>
    %c1_60 = arith.constant 1 : index
    %c0_61 = arith.constant 0 : index
    %c0_62 = arith.constant 0 : index
    %182 = vector.load %arg4[%c1_60, %c0_61, %c0_62] : memref<2x1x128xf32, #tpu.memory_space<vmem>>, vector<1x1x128xf32>
    %183 = vector.shape_cast %182 : vector<1x1x128xf32> to vector<1x128xf32>
    %184 = arith.mulf %181, %181 : vector<16x128xf32>
    %cst_63 = arith.constant dense<0.000000e+00> : vector<16xf32>
    %185 = vector.multi_reduction <add>, %184, %cst_63 [1] : vector<16x128xf32> to vector<16xf32>
    %186 = vector.shape_cast %185 : vector<16xf32> to vector<16x1xf32>
    %cst_64 = arith.constant 1.280000e+02 : f32
    %187 = vector.broadcast %cst_64 : f32 to vector<16x1xf32>
    %188 = arith.divf %186, %187 : vector<16x1xf32>
    %cst_65 = arith.constant 9.99999974E-6 : f32
    %189 = vector.broadcast %cst_65 : f32 to vector<16x1xf32>
    %190 = arith.addf %188, %189 : vector<16x1xf32>
    %191 = math.rsqrt %190 : vector<16x1xf32>
    %192 = vector.broadcast %191 : vector<16x1xf32> to vector<16x128xf32>
    %193 = arith.mulf %181, %192 : vector<16x128xf32>
    %194 = vector.broadcast %183 : vector<1x128xf32> to vector<16x128xf32>
    %195 = arith.mulf %193, %194 : vector<16x128xf32>
    %196 = arith.truncf %195 : vector<16x128xf32> to vector<16x128xbf16>
    %c1_66 = arith.constant 1 : index
    %c0_67 = arith.constant 0 : index
    %c0_68 = arith.constant 0 : index
    %197 = vector.load %arg5[%c1_66, %c0_67, %c0_68] : memref<2x128x512xbf16, #tpu.memory_space<vmem>>, vector<1x128x512xbf16>
    %198 = vector.shape_cast %197 : vector<1x128x512xbf16> to vector<128x512xbf16>
    %cst_69 = arith.constant dense<0.000000e+00> : vector<16x512xf32>
    %199 = tpu.matmul %196, %198, %cst_69 {dimension_numbers = #tpu.dot_dimension_numbers<[1], [0], [0], [1], [0, 0, 1, 1], [], []>} : vector<16x128xbf16>, vector<128x512xbf16>, vector<16x512xf32> -> vector<16x512xf32>
    %200 = vector.extract_strided_slice %199 {offsets = [0, 0], sizes = [16, 256], strides = [1, 1]} : vector<16x512xf32> to vector<16x256xf32>
    %201 = vector.extract_strided_slice %199 {offsets = [0, 256], sizes = [16, 256], strides = [1, 1]} : vector<16x512xf32> to vector<16x256xf32>
    %202 = arith.negf %200 : vector<16x256xf32>
    %203 = math.exp %202 : vector<16x256xf32>
    %cst_70 = arith.constant 1.000000e+00 : f32
    %204 = vector.broadcast %cst_70 : f32 to vector<16x256xf32>
    %205 = arith.addf %204, %203 : vector<16x256xf32>
    %206 = arith.divf %204, %205 : vector<16x256xf32>
    %207 = arith.mulf %200, %206 : vector<16x256xf32>
    %208 = arith.mulf %207, %201 : vector<16x256xf32>
    %209 = arith.truncf %208 : vector<16x256xf32> to vector<16x256xbf16>
    %c1_71 = arith.constant 1 : index
    %c0_72 = arith.constant 0 : index
    %c0_73 = arith.constant 0 : index
    %210 = vector.load %arg6[%c1_71, %c0_72, %c0_73] : memref<2x256x128xbf16, #tpu.memory_space<vmem>>, vector<1x256x128xbf16>
    %211 = vector.shape_cast %210 : vector<1x256x128xbf16> to vector<256x128xbf16>
    %cst_74 = arith.constant dense<0.000000e+00> : vector<16x128xf32>
    %212 = tpu.matmul %209, %211, %cst_74 {dimension_numbers = #tpu.dot_dimension_numbers<[1], [0], [0], [1], [0, 0, 1, 1], [], []>} : vector<16x256xbf16>, vector<256x128xbf16>, vector<16x128xf32> -> vector<16x128xf32>
    %213 = arith.addf %181, %212 : vector<16x128xf32>
    %c0_75 = arith.constant 0 : index
    %c0_76 = arith.constant 0 : index
    %214 = vector.load %arg12[%c0_75, %c0_76] : memref<1x128xf32, #tpu.memory_space<vmem>>, vector<1x128xf32>
    %215 = arith.mulf %213, %213 : vector<16x128xf32>
    %cst_77 = arith.constant dense<0.000000e+00> : vector<16xf32>
    %216 = vector.multi_reduction <add>, %215, %cst_77 [1] : vector<16x128xf32> to vector<16xf32>
    %217 = vector.shape_cast %216 : vector<16xf32> to vector<16x1xf32>
    %cst_78 = arith.constant 1.280000e+02 : f32
    %218 = vector.broadcast %cst_78 : f32 to vector<16x1xf32>
    %219 = arith.divf %217, %218 : vector<16x1xf32>
    %cst_79 = arith.constant 9.99999974E-6 : f32
    %220 = vector.broadcast %cst_79 : f32 to vector<16x1xf32>
    %221 = arith.addf %219, %220 : vector<16x1xf32>
    %222 = math.rsqrt %221 : vector<16x1xf32>
    %223 = vector.broadcast %222 : vector<16x1xf32> to vector<16x128xf32>
    %224 = arith.mulf %213, %223 : vector<16x128xf32>
    %225 = vector.broadcast %214 : vector<1x128xf32> to vector<16x128xf32>
    %226 = arith.mulf %224, %225 : vector<16x128xf32>
    %227 = arith.truncf %226 : vector<16x128xf32> to vector<16x128xbf16>
    %c0_80 = arith.constant 0 : index
    %c0_81 = arith.constant 0 : index
    %228 = vector.load %arg13[%c0_80, %c0_81] : memref<256x128xbf16, #tpu.memory_space<vmem>>, vector<256x128xbf16>
    %cst_82 = arith.constant dense<0.000000e+00> : vector<16x256xf32>
    %229 = tpu.matmul %227, %228, %cst_82 {dimension_numbers = #tpu.dot_dimension_numbers<[1], [1], [0], [0], [0, 0, 1, 0], [], []>} : vector<16x128xbf16>, vector<256x128xbf16>, vector<16x256xf32> -> vector<16x256xf32>
    %c0_83 = arith.constant 0 : index
    %c0_84 = arith.constant 0 : index
    %230 = vector.load %arg14[%c0_83, %c0_84] : memref<16x256xf32, #tpu.memory_space<vmem>>, vector<16x256xf32>
    tpu.vector_store %arg14[%c0_83, %c0_84], %229 {strides = array<i32>} : memref<16x256xf32, #tpu.memory_space<vmem>>, vector<16x256xf32>,
    return
  }
}

</mosaic_0001>

<bundles_post_ra>
// kernel: transformer_forward.1
= control target key start
LH: loop header
LB: loop body
LE: loop exit
PB: predicated region body
PF: predicated region fallthrough
CT: control target
= control target key end

     0   :  { %19 = vsyncpa [#allocation3], 0  ;;  %s5456_s0 = inlined_call_operand.vmem [shape: f32[16,128], index: 0, kind: input, shape index: {}]   ;;  %s5457_s1 = inlined_call_operand.vmem [shape: f32[2,1,128], index: 1, kind: input, shape index: {}]   ;;  %s5458_s2 = inlined_call_operand.hbm [shape: bf16[2,128,384], index: 2, kind: input, shape index: {}]   ;;  %s5459_s3 = inlined_call_operand.hbm [shape: bf16[2,128,128], index: 3, kind: input, shape index: {}]   ;;  %s5460_s4 = inlined_call_operand.vmem [shape: f32[2,1,128], index: 4, kind: input, shape index: {}]   ;;  %s5461_s5 = inlined_call_operand.vmem [shape: bf16[2,128,512], index: 5, kind: input, shape index: {}]   ;;  %s5462_s6 = inlined_call_operand.vmem [shape: bf16[2,256,128], index: 6, kind: input, shape index: {}]   ;;  %s5463_s7 = inlined_call_operand.vmem [shape: f32[64,32], index: 7, kind: input, shape index: {}]   ;;  %s5464_s8 = inlined_call_operand.vmem [shape: f32[64,32], index: 8, kind: input, shape index: {}]   ;;  %s5465_s9 = inlined_call_operand.vmem [shape: f32[64,32], index: 9, kind: input, shape index: {}]   ;;  %s5466_s10 = inlined_call_operand.vmem [shape: f32[64,32], index: 10, kind: input, shape index: {}]   ;;  %s5467_s11 = inlined_call_operand.vmem [shape: f32[64,64], index: 11, kind: input, shape index: {}]   ;;  %s5468_s12 = inlined_call_operand.vmem [shape: f32[1,128], index: 12, kind: input, shape index: {}]   ;;  %s5469_s13 = inlined_call_operand.vmem [shape: bf16[256,128], index: 13, kind: input, shape index: {}]   ;;  %s5470_s14 = inlined_call_operand.vmem [shape: f32[16,256], index: 14, kind: output, shape index: {}]  }
   0x1   :  { %20 = vsyncpa [#allocation5], 0  ;;  %s4196_s29 = smov [#allocation2]   ;;  %s4148_s17 = scalar_lea.hbm %s5458_s2, 6144 }
   0x2   :  { %s30_s30 = sshll.u32 %s4196_s29, 4  ;;  %p4149_p0 = scmp.ne.s32.totalorder %s5458_s2, %s4148_s17  ;;  %s31_s30 = int_to_ptr.vmem [resolvable:$true] %s30_s30 }
   0x3   :  { %p4152_p1 = scmp.lt.u32.totalorder %s4148_s17, %s5458_s2 }
   0x5   :  { %p4154_p2 = pnand %p4152_p1, %p4149_p0 }
   0x7   :  { %4157 = shalt.err (!%p4154_p2)
}
   0x8   :  { %s4158_s22 = scalar_lea.vmem %s31_s30, 6144  ;;  %p4163_p4 = scmp.lt.s32.totalorder %s31_s30, %s31_s30 }
   0x9   :  { %p4159_p3 = scmp.ne.s32.totalorder %s31_s30, %s4158_s22  ;;  %p4164_p5 = scmp.lt.s32.totalorder %s4158_s22, %s4158_s22 }
   0xb   :  { %p4165_p6 = por %p4164_p5, %p4163_p4 }
   0xd   :  { %p4166_p7 = pnand %p4165_p6, %p4159_p3 }
   0xf   :  { %4169 = shalt.err (!%p4166_p7)
}
  0x10   :  { %s4197_s23 = smov 192   ;;  %s4198_s24 = smov 12  }
  0x11   :  { %36 = dma.hbm_to_vmem [thread:$0]  %s5458_s2, 6144, %s31_s30, [#allocation3], %s4197_s23, %s4197_s23, %s4198_s24  }
  0x12   :  { %s4199_s27 = smov [#allocation4]   ;;  %s4170_s16 = scalar_lea.hbm %s5459_s3, 2048 }
  0x13   :  { %s42_s28 = sshll.u32 %s4199_s27, 4  ;;  %p4171_p8 = scmp.ne.s32.totalorder %s5459_s3, %s4170_s16  ;;  %s43_s28 = int_to_ptr.vmem [resolvable:$true] %s42_s28 }
  0x14   :  { %p4174_p9 = scmp.lt.u32.totalorder %s4170_s16, %s5459_s3 }
  0x16   :  { %p4176_p10 = pnand %p4174_p9, %p4171_p8 }
  0x18   :  { %4179 = shalt.err (!%p4176_p10)
}
  0x19   :  { %s4180_s21 = scalar_lea.vmem %s43_s28, 2048  ;;  %p4185_p12 = scmp.lt.s32.totalorder %s43_s28, %s43_s28 }
  0x1a   :  { %p4181_p11 = scmp.ne.s32.totalorder %s43_s28, %s4180_s21  ;;  %p4186_p13 = scmp.lt.s32.totalorder %s4180_s21, %s4180_s21 }
  0x1c   :  { %p4187_p0 = por %p4186_p13, %p4185_p12 }
  0x1e   :  { %p4188_p1 = pnand %p4187_p0, %p4181_p11 }
  0x20   :  { %4191 = shalt.err (!%p4188_p1)
}
  0x21   :  { %s4200_s2 = smov 64   ;;  %s4201_s30 = smov 4  }
  0x22   :  { %48 = dma.hbm_to_vmem [thread:$0]  %s5459_s3, 2048, %s43_s28, [#allocation5], %s4200_s2, %s4200_s2, %s4201_s30  }
  0x23   :  { %4192 = dma.done.wait [#allocation3], 6144  }
  0x24   :  { %4193 = vsyncadd [#allocation3], 4294961152 }
  0x25   :  { %4194 = dma.done.wait [#allocation5], 2048  }
  0x26   :  { %4195 = vsyncadd [#allocation5], 4294965248  ;;  %v76_v0 = vld [vmem:[%s5456_s0] sm:$0xff]  ;;  %v77_v1 = vld [vmem:[%s5456_s0 + $0x8] sm:$0xff]  ;;  %v4202_v18 = vmov 0   ;;  %v4203_v21 = vmov 0.0  }
  0x27   :  { %v119_v2 = vmul.f32 %v76_v0, %v76_v0  ;;  %v3766_v3 = vld [vmem:[#allocation2 + $0x4] ss:$12 sps:$4 sm:$0xff]   ;;  %v3768_v4 = vld [vmem:[#allocation2] ss:$12 sps:$4 sm:$0xff]   ;;  %v3769_v5 = vld [vmem:[#allocation2 + $0x1c] ss:$12 sps:$4 sm:$0xff]   ;;  %v120_v6 = vmul.f32 %v77_v1, %v77_v1  ;;  %335 = vmatprep.mubr.bf16.mxu1 %v4202_v18 }
  0x28   :  { %303 = vmatprep.subr.bf16.mxu1 %v3766_v3  ;;  %v3771_v7 = vld [vmem:[#allocation2 + $0x18] ss:$12 sps:$4 sm:$0xff]   ;;  %v3772_v8 = vld [vmem:[#allocation2 + $0x34] ss:$12 sps:$4 sm:$0xff]   ;;  %v3774_v9 = vld [vmem:[#allocation2 + $0x30] ss:$12 sps:$4 sm:$0xff]  }
  0x29   :  { %121 = vadd.xlane.f32.xlu0 %v119_v2  ;;  %304 = vmatpush1.bf16.msra.mxu1 %v3768_v4  ;;  %v3775_v10 = vld [vmem:[#allocation2 + $0x4c] ss:$12 sps:$4 sm:$0xff]   ;;  %v3777_v11 = vld [vmem:[#allocation2 + $0x48] ss:$12 sps:$4 sm:$0xff]   ;;  %v3778_v12 = vld [vmem:[#allocation2 + $0x64] ss:$12 sps:$4 sm:$0xff]  }
  0x2a   :  { %305 = vmatprep.subr.bf16.mxu1 %v3769_v5  ;;  %v3780_v13 = vld [vmem:[#allocation2 + $0x60] ss:$12 sps:$4 sm:$0xff]   ;;  %v3781_v14 = vld [vmem:[#allocation2 + $0x7c] ss:$12 sps:$4 sm:$0xff]   ;;  %v3783_v15 = vld [vmem:[#allocation2 + $0x78] ss:$12 sps:$4 sm:$0xff]  }
  0x2b   :  { %v3784_v16 = vld [vmem:[#allocation2 + $0x94] ss:$12 sps:$4 sm:$0xff]   ;;  %v3786_v17 = vld [vmem:[#allocation2 + $0x90] ss:$12 sps:$4 sm:$0xff]   ;;  %v3787_v19 = vld [vmem:[#allocation2 + $0xac] ss:$12 sps:$4 sm:$0xff]  }
  0x2c   :  { %v3789_v20 = vld [vmem:[#allocation2 + $0xa8] ss:$12 sps:$4 sm:$0xff]   ;;  %v3140_v31 = vld [vmem:[%s5457_s1] ss:$0 sm:$0xff]  ;;  %vm4204_vm0 = vmmov 0   ;;  %s4205_s29 = smov 96  }
  0x2d   :  { %123 = vadd.xlane.f32.xlu0 %v120_v6  ;;  %306 = vmatpush1.bf16.msra.mxu1 %v3771_v7  ;;  %v3790_v35 = vld [vmem:[#allocation2 + $0x8] ss:$12 sps:$4 sm:$0xff]   ;;  %v3791_v37 = vld [vmem:[#allocation2 + $0x20] ss:$12 sps:$4 sm:$0xff]   ;;  %v3792_v38 = vld [vmem:[#allocation2 + $0x38] ss:$12 sps:$4 sm:$0xff]  }
  0x2e   :  { %307 = vmatprep.subr.bf16.mxu1 %v3772_v8  ;;  %v3793_v39 = vld [vmem:[#allocation2 + $0x50] ss:$12 sps:$4 sm:$0xff]   ;;  %v3794_v40 = vld [vmem:[#allocation2 + $0x68] ss:$12 sps:$4 sm:$0xff]   ;;  %v3795_v41 = vld [vmem:[#allocation2 + $0x80] ss:$12 sps:$4 sm:$0xff]  }
  0x2f   :  { %v3796_v42 = vld [vmem:[#allocation2 + $0x98] ss:$12 sps:$4 sm:$0xff]   ;;  %v3797_v43 = vld [vmem:[#allocation2 + $0xb0] ss:$12 sps:$4 sm:$0xff]   ;;  %s4206_s15 = smov 32   ;;  %s4207_s16 = smov 112  }
  0x30   :  { %s4208_s17 = smov 16   ;;  %vm503_vm1 = vcmask 130048   ;;  %v103_v7 = vld [vmem:[%s5466_s10 + $0x8] sm:$0xff]  ;;  %vm616_vm2 = vcmask 261120   ;;  %vm706_vm3 = vcmask 523264   ;;  %vm908_vm4 = vcmask 785408  }
  0x31   :  { %308 = vmatpush1.bf16.msra.mxu1 %v3774_v9  ;;  %v102_v9 = vld [vmem:[%s5466_s10] sm:$0xff] }
  0x32   :  { %309 = vmatprep.subr.bf16.mxu1 %v3775_v10  ;;  %v94_v10 = vld [vmem:[%s5465_s9] sm:$0xff] }
  0x35   :  { %310 = vmatpush1.bf16.msra.mxu1 %v3777_v11  ;;  %v95_v11 = vld [vmem:[%s5465_s9 + $0x8] sm:$0xff] }
  0x36   :  { %311 = vmatprep.subr.bf16.mxu1 %v3778_v12 }
  0x39   :  { %312 = vmatpush1.bf16.msra.mxu1 %v3780_v13 }
  0x3a   :  { %313 = vmatprep.subr.bf16.mxu1 %v3781_v14 }
  0x3d   :  { %314 = vmatpush1.bf16.msra.mxu1 %v3783_v15 }
  0x3e   :  { %315 = vmatprep.subr.bf16.mxu1 %v3784_v16 }
  0x41   :  { %316 = vmatpush1.bf16.msra.mxu1 %v3786_v17 }
  0x42   :  { %317 = vmatprep.subr.bf16.mxu1 %v3787_v19 }
  0x45   :  { %318 = vmatpush1.bf16.msra.mxu1 %v3789_v20 }
  0x46   :  { %3541 = vmatprep.subr.bf16.mxu1 %v4203_v21 }
  0xb6   :  { %v122_v22 = vpop.xlane.xlu0 %121 }
  0xb7   :  { %v126_v23 = vmul.f32 0.0078125, %v122_v22 }
  0xb9   :  { %v128_v24 = vadd.f32 1e-05, %v126_v23  ;;  %v87_v23 = vld [vmem:[%s5464_s8 + $0x8] sm:$0xff] }
  0xba   :  { %v124_v25 = vpop.xlane.xlu0 %123 }
  0xbb   :  { %3990 = vrsqrt.f32 %v128_v24  ;;  %v127_v26 = vmul.f32 0.0078125, %v124_v25 }
  0xbd   :  { %v129_v27 = vadd.f32 1e-05, %v127_v26  ;;  %v86_v26 = vld [vmem:[%s5464_s8] sm:$0xff] }
  0xbf   :  { %3992 = vrsqrt.f32 %v129_v27  ;;  %v78_v27 = vld [vmem:[%s5463_s7] sm:$0xff] }
  0xc5   :  { %v3991_v28 = vpop.eup %3990 }
  0xc6   :  { %v132_v29 = vmul.f32 %v3991_v28, %v76_v0  ;;  %v79_v28 = vld [vmem:[%s5463_s7 + $0x8] sm:$0xff] }
  0xc8   :  { %v140_v33 = vmul.f32 %v3140_v31, %v132_v29 }
  0xc9   :  { %v3993_v30 = vpop.eup %3992 }
  0xca   :  { %v133_v32 = vmul.f32 %v3993_v30, %v77_v1 }
  0xcc   :  { %v141_v34 = vmul.f32 %v3140_v31, %v133_v32 }
  0xce   :  { %v142_v36 = vpack.c.bf16 %v141_v34, %v140_v33 }
  0xd0   :  { %336 = vmatmul.mubr.bf16.vlgmr.msra.gmra.mrb[0].mxu1 %v142_v36 }
  0xd1   :  { %3542 = vmatpush3.bf16.msra.mxu1 %v3790_v35  ;;  %3557 = vmatprep.mubr.msk.bf16.mxu1 %vm4204_vm0, %v4203_v21 }
  0xd2   :  { %3543 = vmatprep.subr.bf16.mxu1 %v4203_v21 }
  0xd5   :  { %3544 = vmatpush3.bf16.msra.mxu1 %v3791_v37 }
  0xd6   :  { %3545 = vmatprep.subr.bf16.mxu1 %v4203_v21 }
  0xd9   :  { %3546 = vmatpush3.bf16.msra.mxu1 %v3792_v38 }
  0xda   :  { %3547 = vmatprep.subr.bf16.mxu1 %v4203_v21 }
  0xdd   :  { %3548 = vmatpush3.bf16.msra.mxu1 %v3793_v39 }
  0xde   :  { %3549 = vmatprep.subr.bf16.mxu1 %v4203_v21 }
  0xe1   :  { %3550 = vmatpush3.bf16.msra.mxu1 %v3794_v40 }
  0xe2   :  { %3551 = vmatprep.subr.bf16.mxu1 %v4203_v21 }
  0xe5   :  { %3552 = vmatpush3.bf16.msra.mxu1 %v3795_v41 }
  0xe6   :  { %3553 = vmatprep.subr.bf16.mxu1 %v4203_v21 }
  0xe9   :  { %3554 = vmatpush3.bf16.msra.mxu1 %v3796_v42 }
  0xea   :  { %3555 = vmatprep.subr.bf16.mxu1 %v4203_v21 }
  0xed   :  { %3556 = vmatpush3.bf16.msra.mxu1 %v3797_v43 }
  0xf0   :  { %3558 = vmatmul.mubr.bf16.vlgmr.msra.gmra.mrb[4].mxu1 %v142_v36 }
 0x1a3   :  { %v4330_v44 = vpop.f32.mrb[0].mxu1 }
 0x1a4   :  { %v4332_v45 = vpop.f32.mrb[1].mxu1  ;;  %v447_v34 = vmul.f32 %v4330_v44, %v78_v27 }
 0x1a5   :  { %415 = vrot.lane.b32.xlu0 %v4332_v45, %s4200_s2  ;;  %409 = vrot.lane.b32.xlu1 %v4332_v45, %s4205_s29  ;;  %v4338_v46 = vpop.f32.mrb[2].mxu1  ;;  %v528_v16 = vmul.f32 %v4332_v45, %v94_v10 }
 0x1a6   :  { %v4340_v47 = vpop.f32.mrb[3].mxu1  ;;  %v448_v35 = vmul.f32 %v4338_v46, %v79_v28 }
 0x1a7   :  { %v529_v17 = vmul.f32 %v4340_v47, %v95_v11 }
 0x1a9   :  { %397 = vrot.lane.b32.xlu0 %v4338_v46, %s4200_s2  ;;  %411 = vrot.lane.b32.xlu1 %v4340_v47, %s4205_s29 }
 0x1ad   :  { %403 = vrot.lane.b32.xlu0 %v4338_v46, %s4206_s15  ;;  %421 = vrot.lane.b32.xlu1 %v4332_v45, %s4206_s15 }
 0x1b1   :  { %457 = vrot.lane.b32.xlu0 %v4338_v46, %s4207_s16  ;;  %417 = vrot.lane.b32.xlu1 %v4340_v47, %s4200_s2 }
 0x1b5   :  { %481 = vrot.lane.b32.xlu0 %v4338_v46, %s4208_s17  ;;  %389 = vrot.lane.b32.xlu1 %v4330_v44, %s4205_s29 }
 0x1b9   :  { %538 = vrot.lane.b32.xlu0 %v4340_v47, %s4207_s16  ;;  %423 = vrot.lane.b32.xlu1 %v4340_v47, %s4206_s15 }
 0x1bd   :  { %562 = vrot.lane.b32.xlu0 %v4340_v47, %s4208_s17  ;;  %391 = vrot.lane.b32.xlu1 %v4338_v46, %s4205_s29  ;;  %v104_v47 = vld [vmem:[%s5466_s10 + $0x10] sm:$0xff] }
 0x1c1   :  { %395 = vrot.lane.b32.xlu1 %v4330_v44, %s4200_s2 }
 0x1c3   :  { %v380_v48 = vpop.f32.mrb[4].mxu1 }
 0x1c4   :  { %v3559_v49 = vpop.f32.mrb[5].mxu1 }
 0x1c5   :  { %v383_v50 = vpop.f32.mrb[6].mxu1  ;;  %401 = vrot.lane.b32.xlu1 %v4330_v44, %s4206_s15  ;;  %v96_v49 = vld [vmem:[%s5465_s9 + $0x10] sm:$0xff] }
 0x1c6   :  { %v3560_v51 = vpop.f32.mrb[7].mxu1  ;;  %v799_v52 = vpack.c.bf16 %v383_v50, %v380_v48  ;;  %v4370_v53 = vpack.i.bf16 %v383_v50, %v380_v48  ;;  %v97_v50 = vld [vmem:[%s5465_s9 + $0x18] sm:$0xff] }
 0x1c7   :  { %v105_v51 = vld [vmem:[%s5466_s10 + $0x18] sm:$0xff] }
 0x1c8   :  { %3577 = vmatprep.subr.bf16.mxu1 %v799_v52 }
 0x1c9   :  { %3578 = vmatpush3.bf16.msra.mxu1 %v799_v52  ;;  %536 = vrot.lane.b32.xlu1 %v4332_v45, %s4207_s16 }
 0x1cd   :  { %560 = vrot.lane.b32.xlu1 %v4332_v45, %s4208_s17 }
 0x1d1   :  { %455 = vrot.lane.b32.xlu1 %v4330_v44, %s4207_s16 }
 0x1d5   :  { %479 = vrot.lane.b32.xlu1 %v4330_v44, %s4208_s17 }
 0x217   :  { %v4380_v54 = vpop.permute.xlu0 %415  ;;  %v4382_v55 = vpop.permute.xlu1 %409 }
 0x21b   :  { %v4384_v56 = vpop.permute.xlu0 %397  ;;  %v4386_v57 = vpop.permute.xlu1 %411 }
 0x21f   :  { %v4388_v58 = vpop.permute.xlu1 %421  ;;  %v4390_v59 = vpop.permute.xlu0 %403 }
 0x223   :  { %v4392_v60 = vpop.permute.xlu1 %417  ;;  %v458_v61 = vpop.permute.xlu0 %457 }
 0x227   :  { %v4394_v62 = vpop.permute.xlu1 %389  ;;  %v482_v0 = vpop.permute.xlu0 %481 }
 0x228   :  { %459 = vrot.lane.b32.xlu1 %v4394_v62, %s4207_s16  ;;  %v505_v24 = vsel %vm503_vm1, %v458_v61, %v482_v0 }
 0x229   :  { %v513_v29 = vmul.f32 %v505_v24, %v87_v23 }
 0x22b   :  { %v4398_v63 = vpop.permute.xlu1 %423  ;;  %v539_v2 = vpop.permute.xlu0 %538  ;;  %v521_v37 = vadd.f32 %v513_v29, %v448_v35 }
 0x22c   :  { %483 = vrot.lane.b32.xlu1 %v4394_v62, %s4208_s17 }
 0x22f   :  { %v4402_v1 = vpop.permute.xlu1 %391  ;;  %v563_v5 = vpop.permute.xlu0 %562 }
 0x230   :  { %540 = vrot.lane.b32.xlu1 %v4382_v55, %s4207_s16  ;;  %461 = vrot.lane.b32.xlu0 %v4402_v1, %s4207_s16  ;;  %v585_v8 = vsel %vm503_vm1, %v539_v2, %v563_v5  ;;  %v530_v5 = vmul.f32 %v4382_v55, %v96_v49 }
 0x231   :  { %v593_v12 = vmul.f32 %v585_v8, %v103_v7 }
 0x233   :  { %v4408_v3 = vpop.permute.xlu1 %395  ;;  %v601_v22 = vadd.f32 %v593_v12, %v529_v17  ;;  %v106_v12 = vld [vmem:[%s5466_s10 + $0x20] sm:$0xff] }
 0x234   :  { %564 = vrot.lane.b32.xlu1 %v4382_v55, %s4208_s17  ;;  %485 = vrot.lane.b32.xlu0 %v4402_v1, %s4208_s17  ;;  %v99_v55 = vld [vmem:[%s5465_s9 + $0x28] sm:$0xff] }
 0x235   :  { %v533_v24 = vmul.f32 %v4392_v60, %v99_v55 }
 0x237   :  { %v4414_v4 = vpop.permute.xlu1 %401 }
 0x238   :  { %544 = vrot.lane.b32.xlu1 %v4380_v54, %s4207_s16  ;;  %542 = vrot.lane.b32.xlu0 %v4386_v57, %s4207_s16 }
 0x23b   :  { %v537_v6 = vpop.permute.xlu1 %536 }
 0x23c   :  { %568 = vrot.lane.b32.xlu1 %v4380_v54, %s4208_s17  ;;  %566 = vrot.lane.b32.xlu0 %v4386_v57, %s4208_s17 }
 0x23f   :  { %v561_v13 = vpop.permute.xlu1 %560 }
 0x240   :  { %v584_v14 = vsel %vm503_vm1, %v537_v6, %v561_v13  ;;  %548 = vrot.lane.b32.xlu1 %v4388_v58, %s4207_s16  ;;  %546 = vrot.lane.b32.xlu0 %v4392_v60, %s4207_s16  ;;  %v531_v6 = vmul.f32 %v4386_v57, %v97_v50  ;;  %v107_v57 = vld [vmem:[%s5466_s10 + $0x28] sm:$0xff] }
 0x241   :  { %v592_v15 = vmul.f32 %v584_v14, %v102_v9 }
 0x243   :  { %v456_v19 = vpop.permute.xlu1 %455  ;;  %v600_v20 = vadd.f32 %v592_v15, %v528_v16  ;;  %v98_v15 = vld [vmem:[%s5465_s9 + $0x20] sm:$0xff] }
 0x244   :  { %572 = vrot.lane.b32.xlu1 %v4388_v58, %s4208_s17  ;;  %570 = vrot.lane.b32.xlu0 %v4392_v60, %s4208_s17  ;;  %v532_v23 = vmul.f32 %v4380_v54, %v98_v15  ;;  %v101_v54 = vld [vmem:[%s5465_s9 + $0x38] sm:$0xff] }
 0x245   :  { %v612_v25 = vpack.c.bf16 %v601_v22, %v600_v20  ;;  %v109_v60 = vld [vmem:[%s5466_s10 + $0x38] sm:$0xff] }
 0x247   :  { %v480_v30 = vpop.permute.xlu1 %479  ;;  %3685 = vmatprep.subr.msk.bf16.mxu0 %vm616_vm2, %v612_v25  ;;  %v630_v31 = vsel %vm616_vm2, %v612_v25, 0 }
 0x248   :  { %v504_v32 = vsel %vm503_vm1, %v456_v19, %v480_v30  ;;  %550 = vrot.lane.b32.xlu0 %v4398_v63, %s4207_s16  ;;  %463 = vrot.lane.b32.xlu1 %v4408_v3, %s4207_s16  ;;  %v108_v30 = vld [vmem:[%s5466_s10 + $0x30] sm:$0xff] }
 0x249   :  { %v512_v33 = vmul.f32 %v504_v32, %v86_v26  ;;  %3562 = vmatpush3.bf16.xpose.msra.mxu0 %v630_v31 }
 0x24b   :  { %v520_v36 = vadd.f32 %v512_v33, %v447_v34  ;;  %v100_v33 = vld [vmem:[%s5465_s9 + $0x30] sm:$0xff] }
 0x24c   :  { %574 = vrot.lane.b32.xlu0 %v4398_v63, %s4208_s17  ;;  %487 = vrot.lane.b32.xlu1 %v4408_v3, %s4208_s17 }
 0x24d   :  { %v608_v38 = vpack.c.bf16 %v521_v37, %v520_v36 }
 0x24f   :  { %3569 = vmatprep.mubr.msk.bf16.mxu0 %vm616_vm2, %v608_v38 }
 0x250   :  { %465 = vrot.lane.b32.xlu0 %v4384_v56, %s4207_s16  ;;  %467 = vrot.lane.b32.xlu1 %v4414_v4, %s4207_s16 }
 0x254   :  { %489 = vrot.lane.b32.xlu0 %v4384_v56, %s4208_s17  ;;  %491 = vrot.lane.b32.xlu1 %v4414_v4, %s4208_s17 }
 0x258   :  { %469 = vrot.lane.b32.xlu0 %v4390_v59, %s4207_s16 }
 0x25c   :  { %493 = vrot.lane.b32.xlu0 %v4390_v59, %s4208_s17 }
 0x29a   :  { %v4487_v39 = vpop.permute.xlu1 %459 }
 0x29e   :  { %v4489_v40 = vpop.permute.xlu1 %483 }
 0x2a2   :  { %v462_v41 = vpop.permute.xlu0 %461  ;;  %v541_v42 = vpop.permute.xlu1 %540 }
 0x2a6   :  { %v486_v43 = vpop.permute.xlu0 %485  ;;  %v565_v44 = vpop.permute.xlu1 %564 }
 0x2a7   :  { %v586_v48 = vsel %vm503_vm1, %v541_v42, %v565_v44  ;;  %v534_v42 = vmul.f32 %v4388_v58, %v100_v33  ;;  %v535_v44 = vmul.f32 %v4398_v63, %v101_v54  ;;  %v88_v58 = vld [vmem:[%s5464_s8 + $0x10] sm:$0xff]  ;;  %v506_v63 = vsel %vm503_vm1, %v4487_v39, %v4489_v40  ;;  %v82_v39 = vld [vmem:[%s5463_s7 + $0x20] sm:$0xff]  ;;  %v91_v40 = vld [vmem:[%s5464_s8 + $0x28] sm:$0xff] }
 0x2a8   :  { %v594_v52 = vmul.f32 %v586_v48, %v104_v47  ;;  %v507_v47 = vsel %vm503_vm1, %v462_v41, %v486_v43  ;;  %v90_v41 = vld [vmem:[%s5464_s8 + $0x20] sm:$0xff] }
 0x2a9   :  { %v110_v54 = vld [vmem:[%s5467_s11] sm:$0xff] }
 0x2aa   :  { %v543_v45 = vpop.permute.xlu0 %542  ;;  %v545_v46 = vpop.permute.xlu1 %544  ;;  %v602_v8 = vadd.f32 %v594_v52, %v530_v5  ;;  %v81_v52 = vld [vmem:[%s5463_s7 + $0x18] sm:$0xff]  ;;  %v80_v5 = vld [vmem:[%s5463_s7 + $0x10] sm:$0xff] }
 0x2ae   :  { %v567_v61 = vpop.permute.xlu0 %566  ;;  %v569_v0 = vpop.permute.xlu1 %568 }
 0x2af   :  { %v587_v2 = vsel %vm503_vm1, %v543_v45, %v567_v61  ;;  %v588_v13 = vsel %vm503_vm1, %v545_v46, %v569_v0  ;;  %v89_v46 = vld [vmem:[%s5464_s8 + $0x18] sm:$0xff]  ;;  %v83_v61 = vld [vmem:[%s5463_s7 + $0x28] sm:$0xff] }
 0x2b0   :  { %v595_v7 = vmul.f32 %v587_v2, %v105_v51  ;;  %v596_v16 = vmul.f32 %v588_v13, %v106_v12  ;;  %v515_v0 = vmul.f32 %v507_v47, %v89_v46  ;;  %v449_v13 = vmul.f32 %v4394_v62, %v80_v5  ;;  %v85_v62 = vld [vmem:[%s5463_s7 + $0x38] sm:$0xff] }
 0x2b2   :  { %v603_v9 = vadd.f32 %v595_v7, %v531_v6  ;;  %v547_v10 = vpop.permute.xlu0 %546  ;;  %v549_v11 = vpop.permute.xlu1 %548  ;;  %v604_v26 = vadd.f32 %v596_v16, %v532_v23  ;;  %v450_v6 = vmul.f32 %v4402_v1, %v81_v52  ;;  %v514_v7 = vmul.f32 %v506_v63, %v88_v58  ;;  %v115_v52 = vld [vmem:[%s5467_s11 + $0x28] sm:$0xff] }
 0x2b4   :  { %v613_v14 = vpack.c.bf16 %v603_v9, %v602_v8  ;;  %v523_v15 = vadd.f32 %v515_v0, %v450_v6  ;;  %v522_v1 = vadd.f32 %v514_v7, %v449_v13 }
 0x2b6   :  { %v571_v17 = vpop.permute.xlu0 %570  ;;  %v573_v19 = vpop.permute.xlu1 %572  ;;  %3686 = vmatprep.subr.msk.bf16.mxu0 %vm616_vm2, %v613_v14  ;;  %v633_v20 = vsel %vm616_vm2, %v613_v14, 0  ;;  %v451_v14 = vmul.f32 %v4408_v3, %v82_v39  ;;  %v84_v3 = vld [vmem:[%s5463_s7 + $0x30] sm:$0xff] }
 0x2b7   :  { %v589_v22 = vsel %vm503_vm1, %v547_v10, %v571_v17  ;;  %3564 = vmatpush3.bf16.xpose.msra.mxu0 %v633_v20  ;;  %v590_v31 = vsel %vm503_vm1, %v549_v11, %v573_v19  ;;  %v452_v11 = vmul.f32 %v4384_v56, %v83_v61  ;;  %v92_v20 = vld [vmem:[%s5464_s8 + $0x30] sm:$0xff]  ;;  %v117_v61 = vld [vmem:[%s5467_s11 + $0x38] sm:$0xff] }
 0x2b8   :  { %v597_v25 = vmul.f32 %v589_v22, %v107_v57  ;;  %v598_v34 = vmul.f32 %v590_v31, %v108_v30  ;;  %v609_v22 = vpack.c.bf16 %v523_v15, %v522_v1 }
 0x2ba   :  { %v605_v27 = vadd.f32 %v597_v25, %v533_v24  ;;  %v551_v28 = vpop.permute.xlu0 %550  ;;  %v464_v29 = vpop.permute.xlu1 %463  ;;  %v606_v48 = vadd.f32 %v598_v34, %v534_v42  ;;  %v93_v24 = vld [vmem:[%s5464_s8 + $0x38] sm:$0xff] }
 0x2bc   :  { %v614_v32 = vpack.c.bf16 %v605_v27, %v604_v26 }
 0x2be   :  { %v575_v35 = vpop.permute.xlu0 %574  ;;  %v488_v36 = vpop.permute.xlu1 %487  ;;  %3687 = vmatprep.subr.msk.bf16.mxu0 %vm616_vm2, %v614_v32  ;;  %v636_v37 = vsel %vm616_vm2, %v614_v32, 0 }
 0x2bf   :  { %v591_v38 = vsel %vm503_vm1, %v551_v28, %v575_v35  ;;  %3566 = vmatpush3.bf16.xpose.msra.mxu0 %v636_v37  ;;  %v508_v43 = vsel %vm503_vm1, %v464_v29, %v488_v36  ;;  %v454_v28 = vmul.f32 %v4390_v59, %v85_v62  ;;  %v453_v29 = vmul.f32 %v4414_v4, %v84_v3  ;;  %v113_v59 = vld [vmem:[%s5467_s11 + $0x18] sm:$0xff]  ;;  %v111_v4 = vld [vmem:[%s5467_s11 + $0x8] sm:$0xff]  ;;  %v112_v37 = vld [vmem:[%s5467_s11 + $0x10] sm:$0xff] }
 0x2c0   :  { %v599_v45 = vmul.f32 %v591_v38, %v109_v60  ;;  %v516_v8 = vmul.f32 %v508_v43, %v90_v41  ;;  %v116_v43 = vld [vmem:[%s5467_s11 + $0x30] sm:$0xff] }
 0x2c2   :  { %v607_v49 = vadd.f32 %v599_v45, %v535_v44  ;;  %v466_v50 = vpop.permute.xlu0 %465  ;;  %v468_v51 = vpop.permute.xlu1 %467  ;;  %v524_v16 = vadd.f32 %v516_v8, %v451_v14 }
 0x2c4   :  { %v615_v2 = vpack.c.bf16 %v607_v49, %v606_v48  ;;  %v114_v48 = vld [vmem:[%s5467_s11 + $0x20] sm:$0xff] }
 0x2c6   :  { %v490_v9 = vpop.permute.xlu0 %489  ;;  %3688 = vmatprep.subr.msk.bf16.mxu0 %vm616_vm2, %v615_v2  ;;  %v639_v10 = vsel %vm616_vm2, %v615_v2, 0  ;;  %v492_v57 = vpop.permute.xlu1 %491 }
 0x2c7   :  { %v509_v12 = vsel %vm503_vm1, %v466_v50, %v490_v9  ;;  %3568 = vmatpush3.bf16.xpose.msra.mxu0 %v639_v10  ;;  %v510_v56 = vsel %vm503_vm1, %v468_v51, %v492_v57 }
 0x2c8   :  { %v517_v55 = vmul.f32 %v509_v12, %v91_v40  ;;  %v518_v25 = vmul.f32 %v510_v56, %v92_v20 }
 0x2ca   :  { %v525_v17 = vadd.f32 %v517_v55, %v452_v11  ;;  %v470_v19 = vpop.permute.xlu0 %469  ;;  %v526_v31 = vadd.f32 %v518_v25, %v453_v29 }
 0x2cc   :  { %v610_v23 = vpack.c.bf16 %v525_v17, %v524_v16 }
 0x2ce   :  { %v494_v26 = vpop.permute.xlu0 %493  ;;  %3570 = vmatmul.mubr.msk.bf16.vlgmr.msra.gmra.mrb[0].mxu0 %vm616_vm2, %v609_v22 }
 0x2cf   :  { %v511_v27 = vsel %vm503_vm1, %v470_v19, %v494_v26  ;;  %3573 = vmatprep.mubr.msk.bf16.mxu0 %vm616_vm2, %v610_v23 }
 0x2d0   :  { %v519_v30 = vmul.f32 %v511_v27, %v93_v24 }
 0x2d2   :  { %v527_v32 = vadd.f32 %v519_v30, %v454_v28 }
 0x2d4   :  { %v611_v33 = vpack.c.bf16 %v527_v32, %v526_v31 }
 0x2d6   :  { %3574 = vmatmul.mubr.msk.bf16.gmra.mrb[4].mxu0 %vm616_vm2, %v611_v33 }
 0x2d7   :  { %1267 = vmatprep.mubr.bf16.mxu0 %v4202_v18 }
 0x3a1   :  { %v3571_v60 = vpop.f32.mrb[0].mxu0 }
 0x3a2   :  { %v675_v34 = vpop.f32.mrb[1].mxu0  ;;  %v684_v46 = vadd.f32 %v3571_v60, %v112_v37 }
 0x3a3   :  { %v676_v35 = vadd.f32 %v675_v34, %v110_v54  ;;  %v3572_v36 = vpop.f32.mrb[2].mxu0 }
 0x3a4   :  { %v678_v38 = vpop.f32.mrb[3].mxu0  ;;  %v687_v42 = vadd.f32 %v3572_v36, %v113_v59  ;;  %v713_v41 = vsel %vm706_vm3, %v684_v46, -inf }
 0x3a5   :  { %v679_v44 = vadd.f32 %v678_v38, %v111_v4  ;;  %v707_v45 = vsel %vm706_vm3, %v676_v35, -inf }
 0x3a6   :  { %708 = vmax.xlane.f32.xlu1 %v707_v45  ;;  %v716_v50 = vsel %vm706_vm3, %v687_v42, -inf }
 0x3a7   :  { %v710_v47 = vsel %vm706_vm3, %v679_v44, -inf }
 0x3a8   :  { %711 = vmax.xlane.f32.xlu0 %v710_v47 }
 0x3a9   :  { %v3575_v49 = vpop.f32.mrb[4].mxu0 }
 0x3aa   :  { %v691_v51 = vpop.f32.mrb[5].mxu0  ;;  %717 = vmax.xlane.f32.xlu1 %v716_v50  ;;  %v700_v5 = vadd.f32 %v3575_v49, %v116_v43 }
 0x3ab   :  { %v692_v58 = vadd.f32 %v691_v51, %v114_v48  ;;  %v3576_v63 = vpop.f32.mrb[6].mxu0 }
 0x3ac   :  { %v694_v0 = vpop.f32.mrb[7].mxu0  ;;  %714 = vmax.xlane.f32.xlu0 %v713_v41  ;;  %v703_v39 = vadd.f32 %v3576_v63, %v117_v61  ;;  %v725_v7 = vsel %vm706_vm3, %v700_v5, -inf }
 0x3ad   :  { %v695_v2 = vadd.f32 %v694_v0, %v115_v52  ;;  %v719_v40 = vsel %vm706_vm3, %v692_v58, -inf }
 0x3ae   :  { %v728_v8 = vsel %vm706_vm3, %v703_v39, -inf }
 0x3af   :  { %v722_v6 = vsel %vm706_vm3, %v695_v2, -inf }
 0x3b0   :  { %720 = vmax.xlane.f32.xlu0 %v719_v40  ;;  %723 = vmax.xlane.f32.xlu1 %v722_v6 }
 0x3b4   :  { %726 = vmax.xlane.f32.xlu0 %v725_v7  ;;  %729 = vmax.xlane.f32.xlu1 %v728_v8 }
 0x433   :  { %v709_v9 = vpop.xlane.xlu1 %708 }
 0x434   :  { %v731_v13 = vsub.f32 %v676_v35, %v709_v9 }
 0x435   :  { %v712_v10 = vpop.xlane.xlu0 %711 }
 0x436   :  { %v732_v11 = vsub.f32 %v679_v44, %v712_v10  ;;  %v739_v16 = vmul.f32 1.442695, %v731_v13 }
 0x437   :  { %v718_v12 = vpop.xlane.xlu1 %717 }
 0x438   :  { %v734_v14 = vsub.f32 %v687_v42, %v718_v12  ;;  %v741_v15 = vmul.f32 1.442695, %v732_v11 }
 0x439   :  { %v715_v55 = vpop.xlane.xlu0 %714 }
 0x43a   :  { %v745_v57 = vmul.f32 1.442695, %v734_v14  ;;  %v733_v1 = vsub.f32 %v684_v46, %v715_v55 }
 0x43c   :  { %3994 = vpow2.f32 %v745_v57  ;;  %v743_v17 = vmul.f32 1.442695, %v733_v1 }
 0x43d   :  { %3996 = vpow2.f32 %v741_v15  ;;  %v721_v19 = vpop.xlane.xlu0 %720  ;;  %v724_v60 = vpop.xlane.xlu1 %723 }
 0x43e   :  { %3998 = vpow2.f32 %v743_v17  ;;  %v735_v20 = vsub.f32 %v692_v58, %v721_v19  ;;  %v736_v4 = vsub.f32 %v695_v2, %v724_v60  ;;  %v3805_v60 = vld [vmem:[#allocation4 + $0x38] sm:$0xff]  }
 0x43f   :  { %4000 = vpow2.f32 %v739_v16 }
 0x440   :  { %v747_v23 = vmul.f32 1.442695, %v735_v20  ;;  %v749_v36 = vmul.f32 1.442695, %v736_v4 }
 0x441   :  { %v727_v56 = vpop.xlane.xlu0 %726  ;;  %v730_v34 = vpop.xlane.xlu1 %729 }
 0x442   :  { %v737_v22 = vsub.f32 %v700_v5, %v727_v56  ;;  %v738_v59 = vsub.f32 %v703_v39, %v730_v34 }
 0x444   :  { %v751_v62 = vmul.f32 1.442695, %v737_v22  ;;  %v753_v35 = vmul.f32 1.442695, %v738_v59 }
 0x446   :  { %v4631_v3 = vpop.eup %3994  ;;  %4002 = vpow2.f32 %v751_v62 }
 0x447   :  { %v3997_v24 = vpop.eup %3996  ;;  %v764_v25 = vsel %vm706_vm3, %v4631_v3, 0.0  ;;  %4004 = vpow2.f32 %v747_v23 }
 0x448   :  { %v4635_v26 = vpop.eup %3998  ;;  %765 = vadd.xlane.f32.xlu1 %v764_v25  ;;  %v758_v29 = vsel %vm706_vm3, %v3997_v24, 0.0  ;;  %4006 = vpow2.f32 %v753_v35  ;;  %v3800_v25 = vld [vmem:[#allocation4 + $0x10] sm:$0xff]  }
 0x449   :  { %v761_v27 = vsel %vm706_vm3, %v4635_v26, 0.0  ;;  %v4001_v28 = vpop.eup %4000  ;;  %4008 = vpow2.f32 %v749_v36 }
 0x44a   :  { %762 = vadd.xlane.f32.xlu0 %v761_v27  ;;  %v755_v30 = vsel %vm706_vm3, %v4001_v28, 0.0  ;;  %v3802_v27 = vld [vmem:[#allocation4 + $0x20] sm:$0xff]  }
 0x44c   :  { %759 = vadd.xlane.f32.xlu1 %v758_v29  ;;  %v3804_v29 = vld [vmem:[#allocation4 + $0x30] sm:$0xff]  }
 0x44e   :  { %756 = vadd.xlane.f32.xlu0 %v755_v30 }
 0x450   :  { %v4641_v31 = vpop.eup %4002 }
 0x451   :  { %v773_v32 = vsel %vm706_vm3, %v4641_v31, 0.0  ;;  %v4645_v33 = vpop.eup %4004 }
 0x452   :  { %774 = vadd.xlane.f32.xlu0 %v773_v32  ;;  %v767_v54 = vsel %vm706_vm3, %v4645_v33, 0.0  ;;  %v4007_v37 = vpop.eup %4006 }
 0x453   :  { %v776_v38 = vsel %vm706_vm3, %v4007_v37, 0.0  ;;  %v4009_v42 = vpop.eup %4008 }
 0x454   :  { %v770_v44 = vsel %vm706_vm3, %v4009_v42, 0.0 }
 0x456   :  { %768 = vadd.xlane.f32.xlu0 %v767_v54 }
 0x45d   :  { %3712 = vrot.lane.b32.xlu1 %v4370_v53, %s4200_s2 }
 0x46c   :  { %3707 = vrot.lane.b32.xlu0 %v4370_v53, %s4205_s29 }
 0x481   :  { %777 = vadd.xlane.f32.xlu1 %v776_v38 }
 0x485   :  { %771 = vadd.xlane.f32.xlu1 %v770_v44 }
 0x496   :  { %3717 = vrot.lane.b32.xlu1 %v4370_v53, %s4206_s15 }
 0x4d5   :  { %v766_v45 = vpop.xlane.xlu1 %765 }
 0x4d7   :  { %v763_v46 = vpop.xlane.xlu0 %762 }
 0x4d9   :  { %v760_v47 = vpop.xlane.xlu1 %759 }
 0x4da   :  { %4010 = vrcp.f32 %v760_v47 }
 0x4db   :  { %v757_v48 = vpop.xlane.xlu0 %756 }
 0x4dc   :  { %4012 = vrcp.f32 %v757_v48 }
 0x4dd   :  { %v3713_v52 = vpop.permute.xlu1 %3712  ;;  %4014 = vrcp.f32 %v763_v46 }
 0x4de   :  { %v3715_v61 = vunpack.i.h.bf16 %v3713_v52  ;;  %v3714_v0 = vunpack.i.l.bf16 %v3713_v52  ;;  %4016 = vrcp.f32 %v766_v45 }
 0x4df   :  { %v775_v49 = vpop.xlane.xlu0 %774 }
 0x4e0   :  { %v801_v40 = vpack.c.bf16 %v3715_v61, %v3714_v0  ;;  %v3806_v0 = vld [vmem:[%s5461_s5] ss:$16 sps:$4 sm:$0xff]  }
 0x4e3   :  { %v769_v50 = vpop.xlane.xlu0 %768 }
 0x4e4   :  { %v4011_v51 = vpop.eup %4010  ;;  %4018 = vrcp.f32 %v769_v50 }
 0x4e5   :  { %v788_v43 = vmul.f32 %v4011_v51, %v3997_v24  ;;  %v3799_v24 = vld [vmem:[#allocation4 + $0x8] sm:$0xff]  }
 0x4e6   :  { %v4013_v58 = vpop.eup %4012 }
 0x4e7   :  { %v3708_v63 = vpop.permute.xlu0 %3707  ;;  %v787_v41 = vmul.f32 %v4013_v58, %v4001_v28  ;;  %v4015_v8 = vpop.eup %4014  ;;  %v3803_v28 = vld [vmem:[#allocation4 + $0x28] sm:$0xff]  }
 0x4e8   :  { %v3710_v2 = vunpack.i.h.bf16 %v3708_v63  ;;  %v3709_v5 = vunpack.i.l.bf16 %v3708_v63  ;;  %v4017_v12 = vpop.eup %4016  ;;  %v789_v13 = vmul.f32 %v4015_v8, %v4635_v26  ;;  %v3801_v26 = vld [vmem:[#allocation4 + $0x18] sm:$0xff]   ;;  %v3820_v8 = vld [vmem:[%s5461_s5 + $0x44] ss:$16 sps:$4 sm:$0xff]  }
 0x4e9   :  { %v795_v39 = vpack.c.bf16 %v788_v43, %v787_v41  ;;  %v790_v55 = vmul.f32 %v4017_v12, %v4631_v3  ;;  %v3798_v3 = vld [vmem:[#allocation4] sm:$0xff]  }
 0x4ea   :  { %v800_v53 = vpack.c.bf16 %v3710_v2, %v3709_v5  ;;  %v3808_v2 = vld [vmem:[%s5461_s5 + $0x4] ss:$16 sps:$4 sm:$0xff]   ;;  %v3809_v5 = vld [vmem:[%s5461_s5 + $0x8] ss:$16 sps:$4 sm:$0xff]  }
 0x4eb   :  { %3585 = vmatprep.mubr.msk.bf16.mxu1 %vm706_vm3, %v795_v39  ;;  %v796_v1 = vpack.c.bf16 %v790_v55, %v789_v13  ;;  %v3811_v39 = vld [vmem:[%s5461_s5 + $0xc] ss:$16 sps:$4 sm:$0xff]   ;;  %1235 = vmatprep.subr.bf16.mxu0 %v3808_v2  ;;  %v4106_v13 = vld [vmem:[%s5456_s0] sm:$0xff] }
 0x4ec   :  { %3579 = vmatprep.subr.bf16.mxu1 %v800_v53  ;;  %1236 = vmatpush1.bf16.msra.mxu0 %v3806_v0  ;;  %v3860_v0 = vld [vmem:[%s5462_s6 + $0x58] sm:$0xff]  }
 0x4ed   :  { %3580 = vmatpush3.bf16.msra.mxu1 %v800_v53  ;;  %v3814_v53 = vld [vmem:[%s5461_s5 + $0x24] ss:$16 sps:$4 sm:$0xff]   ;;  %v3861_v2 = vld [vmem:[%s5462_s6 + $0x18] sm:$0xff]  }
 0x4ee   :  { %3581 = vmatprep.subr.bf16.mxu1 %v801_v40  ;;  %v4019_v15 = vpop.eup %4018  ;;  %1237 = vmatprep.subr.bf16.mxu0 %v3814_v53  ;;  %v3864_v53 = vld [vmem:[%s5462_s6 + $0x68] sm:$0xff]  }
 0x4ef   :  { %v791_v17 = vmul.f32 %v4019_v15, %v4645_v33 }
 0x4f1   :  { %3582 = vmatpush3.bf16.msra.mxu1 %v801_v40  ;;  %v3817_v40 = vld [vmem:[%s5461_s5 + $0x2c] ss:$16 sps:$4 sm:$0xff]  }
 0x50e   :  { %v778_v6 = vpop.xlane.xlu1 %777 }
 0x512   :  { %v772_v7 = vpop.xlane.xlu1 %771 }
 0x513   :  { %4020 = vrcp.f32 %v772_v7  ;;  %v3815_v7 = vld [vmem:[%s5461_s5 + $0x28] ss:$16 sps:$4 sm:$0xff]  }
 0x514   :  { %4022 = vrcp.f32 %v778_v6  ;;  %v3812_v6 = vld [vmem:[%s5461_s5 + $0x20] ss:$16 sps:$4 sm:$0xff]  }
 0x515   :  { %4024 = vrcp.f32 %v775_v49  ;;  %1238 = vmatpush1.bf16.msra.mxu0 %v3812_v6  ;;  %v3866_v6 = vld [vmem:[%s5462_s6 + $0x70] sm:$0xff]  }
 0x516   :  { %v3718_v9 = vpop.permute.xlu1 %3717  ;;  %1239 = vmatprep.subr.bf16.mxu0 %v3820_v8  ;;  %v3868_v8 = vld [vmem:[%s5462_s6 + $0x78] sm:$0xff]  }
 0x517   :  { %v3720_v10 = vunpack.i.h.bf16 %v3718_v9  ;;  %v3719_v11 = vunpack.i.l.bf16 %v3718_v9  ;;  %v3823_v9 = vld [vmem:[%s5461_s5 + $0x4c] ss:$16 sps:$4 sm:$0xff]  }
 0x519   :  { %v802_v14 = vpack.c.bf16 %v3720_v10, %v3719_v11  ;;  %v3818_v10 = vld [vmem:[%s5461_s5 + $0x40] ss:$16 sps:$4 sm:$0xff]   ;;  %v3821_v11 = vld [vmem:[%s5461_s5 + $0x48] ss:$16 sps:$4 sm:$0xff]  }
 0x51a   :  { %1240 = vmatpush1.bf16.msra.mxu0 %v3818_v10 }
 0x51b   :  { %3583 = vmatprep.subr.bf16.mxu1 %v802_v14 }
 0x51c   :  { %3584 = vmatpush3.bf16.msra.mxu1 %v802_v14 }
 0x51d   :  { %v4021_v57 = vpop.eup %4020  ;;  %3593 = vmatprep.subr.bf16.mxu1 %v4203_v21 }
 0x51e   :  { %v4023_v16 = vpop.eup %4022  ;;  %v792_v19 = vmul.f32 %v4021_v57, %v4009_v42  ;;  %v4107_v57 = vld [vmem:[%s5456_s0 + $0x8] sm:$0xff] }
 0x51f   :  { %3586 = vmatmul.mubr.msk.bf16.vlgmr.msra.gmra.mrb[8].mxu1 %vm706_vm3, %v796_v1  ;;  %v4025_v20 = vpop.eup %4024  ;;  %v794_v22 = vmul.f32 %v4023_v16, %v4007_v37 }
 0x520   :  { %v797_v56 = vpack.c.bf16 %v792_v19, %v791_v17  ;;  %v793_v23 = vmul.f32 %v4025_v20, %v4641_v31  ;;  %3594 = vmatpush3.bf16.msra.mxu1 %v3798_v3  ;;  %v3826_v20 = vld [vmem:[%s5461_s5 + $0x64] ss:$16 sps:$4 sm:$0xff]   ;;  %v3835_v3 = vld [vmem:[%s5461_s5 + $0x8c] ss:$16 sps:$4 sm:$0xff]  }
 0x521   :  { %3595 = vmatprep.subr.bf16.mxu1 %v4203_v21  ;;  %1241 = vmatprep.subr.bf16.mxu0 %v3826_v20 }
 0x522   :  { %3589 = vmatprep.mubr.msk.bf16.mxu1 %vm706_vm3, %v797_v56  ;;  %v798_v62 = vpack.c.bf16 %v794_v22, %v793_v23  ;;  %v3829_v56 = vld [vmem:[%s5461_s5 + $0x6c] ss:$16 sps:$4 sm:$0xff]   ;;  %v3824_v22 = vld [vmem:[%s5461_s5 + $0x60] ss:$16 sps:$4 sm:$0xff]   ;;  %v3827_v23 = vld [vmem:[%s5461_s5 + $0x68] ss:$16 sps:$4 sm:$0xff]  }
 0x523   :  { %1242 = vmatpush1.bf16.msra.mxu0 %v3824_v22 }
 0x524   :  { %3596 = vmatpush3.bf16.msra.mxu1 %v3799_v24  ;;  %v3830_v24 = vld [vmem:[%s5461_s5 + $0x80] ss:$16 sps:$4 sm:$0xff]  }
 0x525   :  { %3597 = vmatprep.subr.bf16.mxu1 %v4203_v21 }
 0x527   :  { %3590 = vmatmul.mubr.msk.bf16.gmra.mrb[12].mxu1 %vm706_vm3, %v798_v62  ;;  %v3832_v62 = vld [vmem:[%s5461_s5 + $0x84] ss:$16 sps:$4 sm:$0xff]  }
 0x528   :  { %3609 = vmatprep.mubr.msk.bf16.mxu1 %vm4204_vm0, %v4203_v21  ;;  %3598 = vmatpush3.bf16.msra.mxu1 %v3800_v25  ;;  %v3833_v25 = vld [vmem:[%s5461_s5 + $0x88] ss:$16 sps:$4 sm:$0xff]  }
 0x529   :  { %3599 = vmatprep.subr.bf16.mxu1 %v4203_v21  ;;  %1243 = vmatprep.subr.bf16.mxu0 %v3832_v62 }
 0x52a   :  { %1244 = vmatpush1.bf16.msra.mxu0 %v3830_v24 }
 0x52c   :  { %3600 = vmatpush3.bf16.msra.mxu1 %v3801_v26  ;;  %v3838_v26 = vld [vmem:[%s5461_s5 + $0xa4] ss:$16 sps:$4 sm:$0xff]  }
 0x52d   :  { %3601 = vmatprep.subr.bf16.mxu1 %v4203_v21  ;;  %1245 = vmatprep.subr.bf16.mxu0 %v3838_v26 }
 0x530   :  { %3602 = vmatpush3.bf16.msra.mxu1 %v3802_v27  ;;  %v3841_v27 = vld [vmem:[%s5461_s5 + $0xac] ss:$16 sps:$4 sm:$0xff]  }
 0x531   :  { %3603 = vmatprep.subr.bf16.mxu1 %v4203_v21 }
 0x534   :  { %3604 = vmatpush3.bf16.msra.mxu1 %v3803_v28  ;;  %v3836_v28 = vld [vmem:[%s5461_s5 + $0xa0] ss:$16 sps:$4 sm:$0xff]  }
 0x535   :  { %3605 = vmatprep.subr.bf16.mxu1 %v4203_v21  ;;  %1246 = vmatpush1.bf16.msra.mxu0 %v3836_v28 }
 0x538   :  { %3606 = vmatpush3.bf16.msra.mxu1 %v3804_v29  ;;  %v3839_v29 = vld [vmem:[%s5461_s5 + $0xa8] ss:$16 sps:$4 sm:$0xff]  }
 0x539   :  { %3607 = vmatprep.subr.bf16.mxu1 %v4203_v21 }
 0x53c   :  { %3608 = vmatpush3.bf16.msra.mxu1 %v3805_v60  ;;  %v3850_v60 = vld [vmem:[%s5461_s5 + $0xe4] ss:$16 sps:$4 sm:$0xff]  }
 0x53d   :  { %1278 = vmatprep.subr.bf16.mxu1 %v3811_v39  ;;  %v3863_v39 = vld [vmem:[%s5462_s6 + $0x20] sm:$0xff]  }
 0x5f2   :  { %v3587_v30 = vpop.f32.mrb[8].mxu1 }
 0x5f3   :  { %v849_v31 = vpop.f32.mrb[9].mxu1 }
 0x5f4   :  { %v3588_v32 = vpop.f32.mrb[10].mxu1 }
 0x5f5   :  { %v3721_v33 = vpack.i.bf16 %v3588_v32, %v3587_v30  ;;  %v852_v54 = vpop.f32.mrb[11].mxu1  ;;  %v3844_v30 = vld [vmem:[%s5461_s5 + $0xc4] ss:$16 sps:$4 sm:$0xff]   ;;  %v3842_v32 = vld [vmem:[%s5461_s5 + $0xc0] ss:$16 sps:$4 sm:$0xff]  }
 0x5f6   :  { %1247 = vmatprep.subr.bf16.mxu0 %v3844_v30 }
 0x5f7   :  { %3722 = vrot.lane.b32.xlu0 %v3721_v33, %s4206_s15  ;;  %v3845_v33 = vld [vmem:[%s5461_s5 + $0xc8] ss:$16 sps:$4 sm:$0xff]   ;;  %1248 = vmatpush1.bf16.msra.mxu0 %v3842_v32 }
 0x5f8   :  { %1249 = vmatprep.subr.bf16.mxu0 %v3850_v60 }
 0x5fa   :  { %v3591_v34 = vpop.f32.mrb[12].mxu1 }
 0x5fb   :  { %v865_v59 = vpop.f32.mrb[13].mxu1 }
 0x5fc   :  { %v3592_v4 = vpop.f32.mrb[14].mxu1 }
 0x5fd   :  { %v3731_v35 = vpack.i.bf16 %v3592_v4, %v3591_v34  ;;  %v868_v36 = vpop.f32.mrb[15].mxu1  ;;  %v3851_v34 = vld [vmem:[%s5461_s5 + $0xe8] ss:$16 sps:$4 sm:$0xff]  }
 0x5fe   :  { %v3726_v37 = vpack.i.bf16 %v868_v36, %v865_v59  ;;  %v3853_v59 = vld [vmem:[%s5461_s5 + $0xec] ss:$16 sps:$4 sm:$0xff]  }
 0x5ff   :  { %3732 = vrot.lane.b32.xlu0 %v3731_v35, %s4205_s29 }
 0x600   :  { %3727 = vrot.lane.b32.xlu1 %v3726_v37, %s4200_s2 }
 0x669   :  { %v3723_v38 = vpop.permute.xlu0 %3722 }
 0x66a   :  { %v3725_v42 = vunpack.i.h.bf16 %v3723_v38  ;;  %v3724_v44 = vunpack.i.l.bf16 %v3723_v38 }
 0x66c   :  { %v904_v49 = vsel %vm616_vm2, %v849_v31, %v3724_v44  ;;  %v905_v50 = vsel %vm616_vm2, %v852_v54, %v3725_v42  ;;  %v3847_v31 = vld [vmem:[%s5461_s5 + $0xcc] ss:$16 sps:$4 sm:$0xff]   ;;  %v3848_v54 = vld [vmem:[%s5461_s5 + $0xe0] ss:$16 sps:$4 sm:$0xff]  }
 0x66d   :  { %1250 = vmatpush1.bf16.msra.mxu0 %v3848_v54 }
 0x671   :  { %v3733_v45 = vpop.permute.xlu0 %3732 }
 0x672   :  { %v3728_v46 = vpop.permute.xlu1 %3727  ;;  %v3735_v51 = vunpack.i.h.bf16 %v3733_v45  ;;  %v3734_v52 = vunpack.i.l.bf16 %v3733_v45 }
 0x673   :  { %v3730_v47 = vunpack.i.h.bf16 %v3728_v46  ;;  %v3729_v48 = vunpack.i.l.bf16 %v3728_v46 }
 0x675   :  { %v907_v58 = vsel %vm706_vm3, %v905_v50, %v3730_v47  ;;  %v906_v63 = vsel %vm706_vm3, %v904_v49, %v3729_v48  ;;  %v3181_v47 = vld [vmem:[%s5460_s4] ss:$0 sm:$0xff] }
 0x676   :  { %v910_v41 = vsel %vm908_vm4, %v907_v58, %v3735_v51  ;;  %v909_v43 = vsel %vm908_vm4, %v906_v63, %v3734_v52  ;;  %v3854_v52 = vld [vmem:[%s5462_s6 + $0x40] sm:$0xff]   ;;  %v3856_v63 = vld [vmem:[%s5462_s6 + $0x48] sm:$0xff]  }
 0x677   :  { %v911_v61 = vpack.c.bf16 %v910_v41, %v909_v43  ;;  %v3855_v58 = vld [vmem:[%s5462_s6] sm:$0xff]   ;;  %3445 = vmatprep.subr.bf16.mxu0 %v3854_v52  ;;  %v3857_v41 = vld [vmem:[%s5462_s6 + $0x8] sm:$0xff]   ;;  %v3858_v43 = vld [vmem:[%s5462_s6 + $0x50] sm:$0xff]  }
 0x679   :  { %3610 = vmatmul.mubr.bf16.vlgmr.msra.gmra.mrb[16].mxu1 %v911_v61  ;;  %v3859_v61 = vld [vmem:[%s5462_s6 + $0x10] sm:$0xff]  }
 0x67a   :  { %1310 = vmatprep.mubr.bf16.mxu1 %v4202_v18  ;;  %1279 = vmatpush1.bf16.msra.mxu1 %v3809_v5  ;;  %v3862_v5 = vld [vmem:[%s5462_s6 + $0x60] sm:$0xff]  }
 0x67b   :  { %1280 = vmatprep.subr.bf16.mxu1 %v3817_v40  ;;  %v3865_v40 = vld [vmem:[%s5462_s6 + $0x28] sm:$0xff]  }
 0x67e   :  { %1281 = vmatpush1.bf16.msra.mxu1 %v3815_v7  ;;  %v3867_v7 = vld [vmem:[%s5462_s6 + $0x30] sm:$0xff]  }
 0x67f   :  { %1282 = vmatprep.subr.bf16.mxu1 %v3823_v9  ;;  %v3869_v9 = vld [vmem:[%s5462_s6 + $0x38] sm:$0xff]  }
 0x682   :  { %1283 = vmatpush1.bf16.msra.mxu1 %v3821_v11 }
 0x683   :  { %1284 = vmatprep.subr.bf16.mxu1 %v3829_v56 }
 0x686   :  { %1285 = vmatpush1.bf16.msra.mxu1 %v3827_v23 }
 0x687   :  { %1286 = vmatprep.subr.bf16.mxu1 %v3835_v3 }
 0x68a   :  { %1287 = vmatpush1.bf16.msra.mxu1 %v3833_v25 }
 0x68b   :  { %1288 = vmatprep.subr.bf16.mxu1 %v3841_v27 }
 0x68e   :  { %1289 = vmatpush1.bf16.msra.mxu1 %v3839_v29 }
 0x68f   :  { %1290 = vmatprep.subr.bf16.mxu1 %v3847_v31 }
 0x692   :  { %1291 = vmatpush1.bf16.msra.mxu1 %v3845_v33 }
 0x693   :  { %1292 = vmatprep.subr.bf16.mxu1 %v3853_v59 }
 0x696   :  { %1293 = vmatpush1.bf16.msra.mxu1 %v3851_v34 }
 0x74c   :  { %v1010_v12 = vpop.f32.mrb[16].mxu1 }
 0x74d   :  { %v4724_v14 = vadd.f32 %v4106_v13, %v1010_v12  ;;  %v3611_v15 = vpop.f32.mrb[17].mxu1 }
 0x74e   :  { %v1013_v55 = vpop.f32.mrb[18].mxu1 }
 0x74f   :  { %v4729_v1 = vadd.f32 %v4107_v57, %v1013_v55  ;;  %v3612_v16 = vpop.f32.mrb[19].mxu1  ;;  %v1020_v17 = vmul.f32 %v4724_v14, %v4724_v14 }
 0x751   :  { %1022 = vadd.xlane.f32.xlu1 %v1020_v17  ;;  %v1021_v19 = vmul.f32 %v4729_v1, %v4729_v1 }
 0x753   :  { %1024 = vadd.xlane.f32.xlu0 %v1021_v19 }
 0x7de   :  { %v1023_v4 = vpop.xlane.xlu1 %1022 }
 0x7df   :  { %v1026_v35 = vmul.f32 0.0078125, %v1023_v4 }
 0x7e0   :  { %v1025_v36 = vpop.xlane.xlu0 %1024 }
 0x7e1   :  { %v1028_v37 = vadd.f32 1e-05, %v1026_v35  ;;  %v1027_v38 = vmul.f32 0.0078125, %v1025_v36 }
 0x7e3   :  { %4026 = vrsqrt.f32 %v1028_v37  ;;  %v1029_v42 = vadd.f32 1e-05, %v1027_v38  ;;  %v3870_v38 = vld [vmem:[#allocation2 + $0xc0] ss:$12 sps:$4 sm:$0xff]  }
 0x7e5   :  { %4028 = vrsqrt.f32 %v1029_v42  ;;  %v3872_v42 = vld [vmem:[#allocation2 + $0xc4] ss:$12 sps:$4 sm:$0xff]  }
 0x7e6   :  { %1712 = vmatprep.subr.bf16.mxu1 %v3872_v42 }
 0x7ed   :  { %v4027_v44 = vpop.eup %4026 }
 0x7ee   :  { %v1032_v45 = vmul.f32 %v4027_v44, %v4724_v14  ;;  %v3873_v44 = vld [vmem:[#allocation2 + $0xc8] ss:$12 sps:$4 sm:$0xff]  }
 0x7ef   :  { %v4029_v46 = vpop.eup %4028 }
 0x7f0   :  { %v1033_v48 = vmul.f32 %v4029_v46, %v4729_v1  ;;  %v1040_v49 = vmul.f32 %v3181_v47, %v1032_v45  ;;  %v3876_v45 = vld [vmem:[#allocation2 + $0xdc] ss:$12 sps:$4 sm:$0xff]   ;;  %v3877_v46 = vld [vmem:[#allocation2 + $0xe0] ss:$12 sps:$4 sm:$0xff]  }
 0x7f2   :  { %v1041_v50 = vmul.f32 %v3181_v47, %v1033_v48  ;;  %v3874_v47 = vld [vmem:[#allocation2 + $0xd8] ss:$12 sps:$4 sm:$0xff]   ;;  %v3880_v48 = vld [vmem:[#allocation2 + $0xf4] ss:$12 sps:$4 sm:$0xff]  }
 0x7f4   :  { %v1042_v51 = vpack.c.bf16 %v1041_v50, %v1040_v49  ;;  %v3878_v49 = vld [vmem:[#allocation2 + $0xf0] ss:$12 sps:$4 sm:$0xff]  }
 0x7f6   :  { %1268 = vmatmul.mubr.bf16.vlgmr.msra.gmra.mrb[8].mxu0 %v1042_v51  ;;  %1311 = vmatmul.mubr.bf16.vlgmr.msra.gmra.mrb[20].mxu1 %v1042_v51 }
 0x7f7   :  { %1744 = vmatprep.mubr.bf16.mxu1 %v4202_v18  ;;  %3446 = vmatpush3.bf16.msra.mxu0 %v3855_v58 }
 0x7f8   :  { %3447 = vmatprep.subr.bf16.mxu0 %v3856_v63  ;;  %1713 = vmatpush1.bf16.msra.mxu1 %v3870_v38 }
 0x7f9   :  { %1714 = vmatprep.subr.bf16.mxu1 %v3876_v45 }
 0x7fb   :  { %3448 = vmatpush3.bf16.msra.mxu0 %v3857_v41 }
 0x7fc   :  { %3449 = vmatprep.subr.bf16.mxu0 %v3858_v43  ;;  %1715 = vmatpush1.bf16.msra.mxu1 %v3874_v47 }
 0x7fd   :  { %1716 = vmatprep.subr.bf16.mxu1 %v3880_v48 }
 0x7ff   :  { %3450 = vmatpush3.bf16.msra.mxu0 %v3859_v61 }
 0x800   :  { %3451 = vmatprep.subr.bf16.mxu0 %v3860_v0  ;;  %1717 = vmatpush1.bf16.msra.mxu1 %v3878_v49 }
 0x803   :  { %3452 = vmatpush3.bf16.msra.mxu0 %v3861_v2 }
 0x804   :  { %3453 = vmatprep.subr.bf16.mxu0 %v3862_v5  ;;  %v3881_v5 = vld [vmem:[#allocation2 + $0xf8] ss:$12 sps:$4 sm:$0xff]  }
 0x807   :  { %3454 = vmatpush3.bf16.msra.mxu0 %v3863_v39  ;;  %v3884_v39 = vld [vmem:[#allocation2 + $0x10c] ss:$12 sps:$4 sm:$0xff]  }
 0x808   :  { %3455 = vmatprep.subr.bf16.mxu0 %v3864_v53  ;;  %v3882_v53 = vld [vmem:[#allocation2 + $0x108] ss:$12 sps:$4 sm:$0xff]   ;;  %1718 = vmatprep.subr.bf16.mxu1 %v3884_v39 }
 0x809   :  { %1719 = vmatpush1.bf16.msra.mxu1 %v3882_v53 }
 0x80b   :  { %3456 = vmatpush3.bf16.msra.mxu0 %v3865_v40  ;;  %v3888_v40 = vld [vmem:[#allocation2 + $0x124] ss:$12 sps:$4 sm:$0xff]  }
 0x80c   :  { %3457 = vmatprep.subr.bf16.mxu0 %v3866_v6  ;;  %v3889_v6 = vld [vmem:[#allocation2 + $0x128] ss:$12 sps:$4 sm:$0xff]   ;;  %1720 = vmatprep.subr.bf16.mxu1 %v3888_v40 }
 0x80f   :  { %3458 = vmatpush3.bf16.msra.mxu0 %v3867_v7  ;;  %v3892_v7 = vld [vmem:[#allocation2 + $0x13c] ss:$12 sps:$4 sm:$0xff]  }
 0x810   :  { %3459 = vmatprep.subr.bf16.mxu0 %v3868_v8  ;;  %v3890_v8 = vld [vmem:[#allocation2 + $0x138] ss:$12 sps:$4 sm:$0xff]  }
 0x813   :  { %3460 = vmatpush3.bf16.msra.mxu0 %v3869_v9  ;;  %v3893_v9 = vld [vmem:[#allocation2 + $0x140] ss:$12 sps:$4 sm:$0xff]  }
 0x814   :  { %3613 = vmatprep.subr.bf16.mxu0 %v4203_v21 }
 0x8c9   :  { %v1269_v10 = vpop.f32.mrb[8].mxu0  ;;  %v1312_v11 = vpop.f32.mrb[20].mxu1 }
 0x8ca   :  { %v3214_v12 = vmul.f32 -1.442695, %v1269_v10  ;;  %v1271_v13 = vpop.f32.mrb[9].mxu0  ;;  %v1314_v15 = vpop.f32.mrb[21].mxu1 }
 0x8cb   :  { %v3215_v55 = vmul.f32 -1.442695, %v1271_v13  ;;  %v1273_v57 = vpop.f32.mrb[10].mxu0  ;;  %v1316_v16 = vpop.f32.mrb[22].mxu1 }
 0x8cc   :  { %4030 = vpow2.f32 %v3214_v12  ;;  %v3216_v17 = vmul.f32 -1.442695, %v1273_v57  ;;  %v1275_v19 = vpop.f32.mrb[11].mxu0  ;;  %v1318_v20 = vpop.f32.mrb[23].mxu1  ;;  %v3897_v12 = vld [vmem:[#allocation2 + $0x158] ss:$12 sps:$4 sm:$0xff]  }
 0x8cd   :  { %4032 = vpow2.f32 %v3215_v55  ;;  %v3217_v56 = vmul.f32 -1.442695, %v1275_v19  ;;  %v3901_v55 = vld [vmem:[#allocation2 + $0x170] ss:$12 sps:$4 sm:$0xff]  }
 0x8ce   :  { %4034 = vpow2.f32 %v3216_v17 }
 0x8cf   :  { %4036 = vpow2.f32 %v3217_v56 }
 0x8d6   :  { %v4031_v22 = vpop.eup %4030 }
 0x8d7   :  { %v4033_v23 = vpop.eup %4032  ;;  %v1333_v62 = vadd.f32 1.0, %v4031_v22 }
 0x8d8   :  { %v4035_v3 = vpop.eup %4034  ;;  %v1334_v24 = vadd.f32 1.0, %v4033_v23 }
 0x8d9   :  { %v4037_v25 = vpop.eup %4036  ;;  %4038 = vrcp.f32 %v1333_v62  ;;  %v1335_v26 = vadd.f32 1.0, %v4035_v3  ;;  %v3235_v3 = vld [vmem:[%s5457_s1 + $0x1] ss:$0 sm:$0xff] }
 0x8da   :  { %4040 = vrcp.f32 %v1334_v24  ;;  %v1336_v27 = vadd.f32 1.0, %v4037_v25 }
 0x8db   :  { %4042 = vrcp.f32 %v1335_v26 }
 0x8dc   :  { %4044 = vrcp.f32 %v1336_v27 }
 0x8e3   :  { %v4039_v28 = vpop.eup %4038 }
 0x8e4   :  { %v4041_v29 = vpop.eup %4040  ;;  %v1345_v30 = vmul.f32 %v4039_v28, %v1269_v10  ;;  %v3896_v10 = vld [vmem:[#allocation2 + $0x154] ss:$12 sps:$4 sm:$0xff]  }
 0x8e5   :  { %v4043_v31 = vpop.eup %4042  ;;  %v1346_v32 = vmul.f32 %v4041_v29, %v1271_v13  ;;  %v3900_v13 = vld [vmem:[#allocation2 + $0x16c] ss:$12 sps:$4 sm:$0xff]  }
 0x8e6   :  { %v4045_v33 = vpop.eup %4044  ;;  %v1349_v54 = vmul.f32 %v1345_v30, %v1312_v11  ;;  %v1347_v60 = vmul.f32 %v4043_v31, %v1273_v57  ;;  %v3894_v11 = vld [vmem:[#allocation2 + $0x150] ss:$12 sps:$4 sm:$0xff]  }
 0x8e7   :  { %v1350_v34 = vmul.f32 %v1346_v32, %v1314_v15  ;;  %v1348_v59 = vmul.f32 %v4045_v33, %v1275_v19  ;;  %v3898_v15 = vld [vmem:[#allocation2 + $0x168] ss:$12 sps:$4 sm:$0xff]  }
 0x8e8   :  { %v1351_v4 = vmul.f32 %v1347_v60, %v1316_v16 }
 0x8e9   :  { %v1352_v35 = vmul.f32 %v1348_v59, %v1318_v20 }
 0x8ea   :  { %v1353_v36 = vpack.c.bf16 %v1351_v4, %v1349_v54 }
 0x8eb   :  { %v1354_v37 = vpack.c.bf16 %v1352_v35, %v1350_v34 }
 0x8ed   :  { %1515 = vmatprep.mubr.bf16.mxu0 %v1354_v37 }
 0x8ee   :  { %1516 = vmatmul.mubr.bf16.vlgmr.msra.gmra.mrb[12].mxu0 %v1353_v36 }
 0x8ef   :  { %3629 = vmatprep.mubr.msk.bf16.mxu0 %vm4204_vm0, %v4203_v21  ;;  %3614 = vmatpush3.bf16.msra.mxu0 %v3873_v44 }
 0x8f0   :  { %3615 = vmatprep.subr.bf16.mxu0 %v4203_v21 }
 0x8f3   :  { %3616 = vmatpush3.bf16.msra.mxu0 %v3877_v46 }
 0x8f4   :  { %3617 = vmatprep.subr.bf16.mxu0 %v4203_v21 }
 0x8f7   :  { %3618 = vmatpush3.bf16.msra.mxu0 %v3881_v5  ;;  %v4108_v5 = vld [vmem:[%s5466_s10] sm:$0xff] }
 0x8f8   :  { %3619 = vmatprep.subr.bf16.mxu0 %v4203_v21 }
 0x9c1   :  { %v3461_v50 = vpop.f32.mrb[12].mxu0 }
 0x9c2   :  { %v3462_v51 = vpop.f32.mrb[13].mxu0 }
 0x9c3   :  { %v3463_v52 = vadd.f32 %v3462_v51, %v3461_v50  ;;  %v3464_v58 = vpop.f32.mrb[14].mxu0 }
 0x9c4   :  { %v3465_v63 = vpop.f32.mrb[15].mxu0 }
 0x9c5   :  { %v4855_v41 = vadd.f32 %v3463_v52, %v4724_v14  ;;  %v3466_v43 = vadd.f32 %v3465_v63, %v3464_v58  ;;  %v3885_v14 = vld [vmem:[#allocation2 + $0x110] ss:$12 sps:$4 sm:$0xff]  }
 0x9c6   :  { %3620 = vmatpush3.bf16.msra.mxu0 %v3885_v14 }
 0x9c7   :  { %v4858_v61 = vadd.f32 %v3466_v43, %v4729_v1  ;;  %v1528_v0 = vmul.f32 %v4855_v41, %v4855_v41  ;;  %v3886_v1 = vld [vmem:[#allocation2 + $0x120] ss:$12 sps:$4 sm:$0xff]   ;;  %3621 = vmatprep.subr.bf16.mxu0 %v4203_v21 }
 0x9c8   :  { %1721 = vmatpush1.bf16.msra.mxu1 %v3886_v1  ;;  %v4109_v1 = vld [vmem:[%s5464_s8 + $0x8] sm:$0xff] }
 0x9c9   :  { %1530 = vadd.xlane.f32.xlu0 %v1528_v0  ;;  %v1529_v2 = vmul.f32 %v4858_v61, %v4858_v61  ;;  %1722 = vmatprep.subr.bf16.mxu1 %v3892_v7 }
 0x9ca   :  { %3622 = vmatpush3.bf16.msra.mxu0 %v3889_v6  ;;  %v4110_v6 = vld [vmem:[%s5465_s9] sm:$0xff] }
 0x9cb   :  { %1532 = vadd.xlane.f32.xlu1 %v1529_v2  ;;  %3623 = vmatprep.subr.bf16.mxu0 %v4203_v21 }
 0x9cc   :  { %1723 = vmatpush1.bf16.msra.mxu1 %v3890_v8  ;;  %v4111_v8 = vld [vmem:[%s5465_s9 + $0x8] sm:$0xff] }
 0x9cd   :  { %1724 = vmatprep.subr.bf16.mxu1 %v3896_v10  ;;  %v4112_v10 = vld [vmem:[%s5466_s10 + $0x8] sm:$0xff] }
 0x9ce   :  { %3624 = vmatpush3.bf16.msra.mxu0 %v3893_v9 }
 0x9cf   :  { %3625 = vmatprep.subr.bf16.mxu0 %v4203_v21 }
 0x9d0   :  { %1725 = vmatpush1.bf16.msra.mxu1 %v3894_v11 }
 0x9d1   :  { %1726 = vmatprep.subr.bf16.mxu1 %v3900_v13  ;;  %v4113_v13 = vld [vmem:[%s5463_s7] sm:$0xff] }
 0x9d2   :  { %3626 = vmatpush3.bf16.msra.mxu0 %v3897_v12 }
 0x9d3   :  { %3627 = vmatprep.subr.bf16.mxu0 %v4203_v21 }
 0x9d4   :  { %1727 = vmatpush1.bf16.msra.mxu1 %v3898_v15 }
 0x9d6   :  { %3628 = vmatpush3.bf16.msra.mxu0 %v3901_v55 }
 0xa56   :  { %v1531_v57 = vpop.xlane.xlu0 %1530 }
 0xa57   :  { %v1534_v16 = vmul.f32 0.0078125, %v1531_v57  ;;  %v4114_v57 = vld [vmem:[%s5463_s7 + $0x8] sm:$0xff] }
 0xa58   :  { %v1533_v17 = vpop.xlane.xlu1 %1532 }
 0xa59   :  { %v1536_v19 = vadd.f32 1e-05, %v1534_v16  ;;  %v1535_v20 = vmul.f32 0.0078125, %v1533_v17 }
 0xa5b   :  { %4046 = vrsqrt.f32 %v1536_v19  ;;  %v1537_v56 = vadd.f32 1e-05, %v1535_v20  ;;  %v4115_v20 = vld [vmem:[%s5464_s8] sm:$0xff] }
 0xa5d   :  { %4048 = vrsqrt.f32 %v1537_v56 }
 0xa65   :  { %v4047_v22 = vpop.eup %4046 }
 0xa66   :  { %v1540_v23 = vmul.f32 %v4047_v22, %v4855_v41 }
 0xa67   :  { %v4049_v62 = vpop.eup %4048 }
 0xa68   :  { %v1541_v24 = vmul.f32 %v4049_v62, %v4858_v61  ;;  %v1548_v25 = vmul.f32 %v3235_v3, %v1540_v23 }
 0xa6a   :  { %v1549_v26 = vmul.f32 %v3235_v3, %v1541_v24 }
 0xa6c   :  { %v1550_v27 = vpack.c.bf16 %v1549_v26, %v1548_v25 }
 0xa6e   :  { %1745 = vmatmul.mubr.bf16.vlgmr.msra.gmra.mrb[24].mxu1 %v1550_v27  ;;  %3630 = vmatmul.mubr.bf16.vlgmr.msra.gmra.mrb[16].mxu0 %v1550_v27 }
 0xb41   :  { %v4874_v28 = vpop.f32.mrb[24].mxu1  ;;  %v1789_v29 = vpop.f32.mrb[16].mxu0 }
 0xb42   :  { %v4876_v30 = vpop.f32.mrb[25].mxu1  ;;  %v3631_v31 = vpop.f32.mrb[17].mxu0  ;;  %v1856_v15 = vmul.f32 %v4113_v13, %v4874_v28 }
 0xb43   :  { %v1792_v32 = vpop.f32.mrb[18].mxu0  ;;  %1818 = vrot.lane.b32.xlu0 %v4876_v30, %s4205_s29  ;;  %v4880_v33 = vpop.f32.mrb[26].mxu1  ;;  %v1936_v7 = vmul.f32 %v4110_v6, %v4876_v30 }
 0xb44   :  { %v4882_v54 = vpack.i.bf16 %v1792_v32, %v1789_v29  ;;  %v4884_v60 = vpop.f32.mrb[27].mxu1  ;;  %v3632_v34 = vpop.f32.mrb[19].mxu0  ;;  %v2205_v59 = vpack.c.bf16 %v1792_v32, %v1789_v29  ;;  %v1857_v16 = vmul.f32 %v4114_v57, %v4880_v33  ;;  %v4116_v29 = vld [vmem:[%s5464_s8 + $0x18] sm:$0xff] }
 0xb45   :  { %1820 = vrot.lane.b32.xlu1 %v4884_v60, %s4205_s29  ;;  %v1937_v9 = vmul.f32 %v4111_v8, %v4884_v60  ;;  %v4118_v34 = vld [vmem:[%s5463_s7 + $0x10] sm:$0xff] }
 0xb46   :  { %3649 = vmatprep.subr.bf16.mxu0 %v2205_v59 }
 0xb47   :  { %3650 = vmatpush3.bf16.msra.mxu0 %v2205_v59  ;;  %1826 = vrot.lane.b32.xlu0 %v4884_v60, %s4200_s2 }
 0xb49   :  { %1824 = vrot.lane.b32.xlu1 %v4876_v30, %s4200_s2 }
 0xb4b   :  { %1832 = vrot.lane.b32.xlu0 %v4884_v60, %s4206_s15 }
 0xb4d   :  { %1830 = vrot.lane.b32.xlu1 %v4876_v30, %s4206_s15 }
 0xb4f   :  { %1800 = vrot.lane.b32.xlu0 %v4880_v33, %s4205_s29 }
 0xb51   :  { %1798 = vrot.lane.b32.xlu1 %v4874_v28, %s4205_s29 }
 0xb53   :  { %1806 = vrot.lane.b32.xlu0 %v4880_v33, %s4200_s2 }
 0xb55   :  { %1804 = vrot.lane.b32.xlu1 %v4874_v28, %s4200_s2 }
 0xb57   :  { %1812 = vrot.lane.b32.xlu0 %v4880_v33, %s4206_s15 }
 0xb59   :  { %1810 = vrot.lane.b32.xlu1 %v4874_v28, %s4206_s15 }
 0xb5b   :  { %1866 = vrot.lane.b32.xlu0 %v4880_v33, %s4207_s16 }
 0xb5d   :  { %1944 = vrot.lane.b32.xlu1 %v4876_v30, %s4207_s16 }
 0xb5f   :  { %1890 = vrot.lane.b32.xlu0 %v4880_v33, %s4208_s17  ;;  %v4117_v33 = vld [vmem:[%s5463_s7 + $0x18] sm:$0xff] }
 0xb61   :  { %1968 = vrot.lane.b32.xlu1 %v4876_v30, %s4208_s17 }
 0xb63   :  { %1946 = vrot.lane.b32.xlu0 %v4884_v60, %s4207_s16 }
 0xb65   :  { %1864 = vrot.lane.b32.xlu1 %v4874_v28, %s4207_s16 }
 0xb67   :  { %1970 = vrot.lane.b32.xlu0 %v4884_v60, %s4208_s17 }
 0xb69   :  { %1888 = vrot.lane.b32.xlu1 %v4874_v28, %s4208_s17 }
 0xbb5   :  { %v4924_v4 = vpop.permute.xlu0 %1818 }
 0xbb7   :  { %v4926_v35 = vpop.permute.xlu1 %1820 }
 0xbb9   :  { %v4928_v36 = vpop.permute.xlu0 %1826 }
 0xbbb   :  { %v4930_v37 = vpop.permute.xlu1 %1824 }
 0xbbd   :  { %v4932_v38 = vpop.permute.xlu0 %1832 }
 0xbbf   :  { %v4934_v42 = vpop.permute.xlu1 %1830 }
 0xbc1   :  { %v4936_v44 = vpop.permute.xlu0 %1800 }
 0xbc2   :  { %1870 = vrot.lane.b32.xlu0 %v4936_v44, %s4207_s16  ;;  %v1859_v60 = vmul.f32 %v4117_v33, %v4936_v44  ;;  %v4129_v33 = vld [vmem:[%s5465_s9 + $0x38] sm:$0xff] }
 0xbc3   :  { %v4940_v45 = vpop.permute.xlu1 %1798 }
 0xbc4   :  { %1868 = vrot.lane.b32.xlu1 %v4940_v45, %s4207_s16  ;;  %v1858_v59 = vmul.f32 %v4118_v34, %v4940_v45  ;;  %v4130_v34 = vld [vmem:[%s5465_s9 + $0x30] sm:$0xff] }
 0xbc5   :  { %v4944_v46 = vpop.permute.xlu0 %1806 }
 0xbc6   :  { %1894 = vrot.lane.b32.xlu0 %v4936_v44, %s4208_s17 }
 0xbc7   :  { %v4948_v47 = vpop.permute.xlu1 %1804 }
 0xbc8   :  { %1892 = vrot.lane.b32.xlu1 %v4940_v45, %s4208_s17  ;;  %v4120_v45 = vld [vmem:[%s5466_s10 + $0x18] sm:$0xff] }
 0xbc9   :  { %v4952_v48 = vpop.permute.xlu0 %1812 }
 0xbca   :  { %1950 = vrot.lane.b32.xlu0 %v4926_v35, %s4207_s16 }
 0xbcb   :  { %v4956_v49 = vpop.permute.xlu1 %1810 }
 0xbcc   :  { %1948 = vrot.lane.b32.xlu1 %v4924_v4, %s4207_s16 }
 0xbcd   :  { %v1867_v50 = vpop.permute.xlu0 %1866 }
 0xbce   :  { %1974 = vrot.lane.b32.xlu0 %v4926_v35, %s4208_s17 }
 0xbcf   :  { %v1945_v51 = vpop.permute.xlu1 %1944 }
 0xbd0   :  { %1972 = vrot.lane.b32.xlu1 %v4924_v4, %s4208_s17 }
 0xbd1   :  { %v1891_v52 = vpop.permute.xlu0 %1890 }
 0xbd2   :  { %1954 = vrot.lane.b32.xlu0 %v4928_v36, %s4207_s16  ;;  %v1913_v2 = vsel %vm503_vm1, %v1867_v50, %v1891_v52  ;;  %v4119_v50 = vld [vmem:[%s5464_s8 + $0x10] sm:$0xff] }
 0xbd3   :  { %v1969_v58 = vpop.permute.xlu1 %1968  ;;  %v1921_v40 = vmul.f32 %v4109_v1, %v1913_v2 }
 0xbd4   :  { %1952 = vrot.lane.b32.xlu1 %v4930_v37, %s4207_s16  ;;  %v1992_v43 = vsel %vm503_vm1, %v1945_v51, %v1969_v58 }
 0xbd5   :  { %v1947_v63 = vpop.permute.xlu0 %1946  ;;  %v2000_v39 = vmul.f32 %v4108_v5, %v1992_v43  ;;  %v1929_v22 = vadd.f32 %v1921_v40, %v1857_v16  ;;  %v4122_v40 = vld [vmem:[%s5465_s9 + $0x18] sm:$0xff] }
 0xbd6   :  { %1978 = vrot.lane.b32.xlu0 %v4928_v36, %s4208_s17  ;;  %v1939_v6 = vmul.f32 %v4122_v40, %v4926_v35  ;;  %v4133_v40 = vld [vmem:[%s5463_s7 + $0x28] sm:$0xff] }
 0xbd7   :  { %v1865_v0 = vpop.permute.xlu1 %1864  ;;  %v2008_v17 = vadd.f32 %v2000_v39, %v1936_v7  ;;  %v4123_v7 = vld [vmem:[%s5466_s10 + $0x10] sm:$0xff] }
 0xbd8   :  { %1976 = vrot.lane.b32.xlu1 %v4930_v37, %s4208_s17 }
 0xbd9   :  { %v1971_v53 = vpop.permute.xlu0 %1970 }
 0xbda   :  { %v1993_v14 = vsel %vm503_vm1, %v1947_v63, %v1971_v53  ;;  %1958 = vrot.lane.b32.xlu0 %v4932_v38, %s4207_s16 }
 0xbdb   :  { %v2001_v11 = vmul.f32 %v4112_v10, %v1993_v14  ;;  %v1889_v12 = vpop.permute.xlu1 %1888  ;;  %v4121_v14 = vld [vmem:[%s5465_s9 + $0x10] sm:$0xff] }
 0xbdc   :  { %v1912_v55 = vsel %vm503_vm1, %v1865_v0, %v1889_v12  ;;  %1956 = vrot.lane.b32.xlu1 %v4934_v42, %s4207_s16  ;;  %v1938_v1 = vmul.f32 %v4121_v14, %v4924_v4  ;;  %v4124_v4 = vld [vmem:[%s5466_s10 + $0x28] sm:$0xff] }
 0xbdd   :  { %v2009_v19 = vadd.f32 %v2001_v11, %v1937_v9  ;;  %v1920_v56 = vmul.f32 %v4115_v20, %v1912_v55 }
 0xbde   :  { %1982 = vrot.lane.b32.xlu0 %v4932_v38, %s4208_s17 }
 0xbdf   :  { %v2020_v23 = vpack.c.bf16 %v2009_v19, %v2008_v17  ;;  %v1928_v62 = vadd.f32 %v1920_v56, %v1856_v15  ;;  %v4125_v19 = vld [vmem:[%s5465_s9 + $0x28] sm:$0xff]  ;;  %v4126_v56 = vld [vmem:[%s5465_s9 + $0x20] sm:$0xff] }
 0xbe0   :  { %1980 = vrot.lane.b32.xlu1 %v4934_v42, %s4208_s17  ;;  %v1941_v20 = vmul.f32 %v4125_v19, %v4928_v36  ;;  %v4128_v36 = vld [vmem:[%s5466_s10 + $0x38] sm:$0xff] }
 0xbe1   :  { %v2016_v3 = vpack.c.bf16 %v1929_v22, %v1928_v62  ;;  %3689 = vmatprep.subr.msk.bf16.mxu1 %vm616_vm2, %v2020_v23  ;;  %v2037_v24 = vsel %vm616_vm2, %v2020_v23, 0  ;;  %v1940_v22 = vmul.f32 %v4126_v56, %v4930_v37  ;;  %v4127_v23 = vld [vmem:[%s5466_s10 + $0x20] sm:$0xff] }
 0xbe2   :  { %1874 = vrot.lane.b32.xlu0 %v4944_v46, %s4207_s16  ;;  %3634 = vmatpush3.bf16.xpose.msra.mxu1 %v2037_v24 }
 0xbe3   :  { %3641 = vmatprep.mubr.msk.bf16.mxu1 %vm616_vm2, %v2016_v3 }
 0xbe4   :  { %1872 = vrot.lane.b32.xlu1 %v4948_v47, %s4207_s16 }
 0xbe6   :  { %1898 = vrot.lane.b32.xlu0 %v4944_v46, %s4208_s17 }
 0xbe8   :  { %1896 = vrot.lane.b32.xlu1 %v4948_v47, %s4208_s17 }
 0xbea   :  { %1878 = vrot.lane.b32.xlu0 %v4952_v48, %s4207_s16 }
 0xbec   :  { %1876 = vrot.lane.b32.xlu1 %v4956_v49, %s4207_s16 }
 0xbee   :  { %1902 = vrot.lane.b32.xlu0 %v4952_v48, %s4208_s17 }
 0xbf0   :  { %1900 = vrot.lane.b32.xlu1 %v4956_v49, %s4208_s17 }
 0xc34   :  { %v1871_v25 = vpop.permute.xlu0 %1870 }
 0xc36   :  { %v1869_v26 = vpop.permute.xlu1 %1868 }
 0xc38   :  { %v1895_v27 = vpop.permute.xlu0 %1894 }
 0xc39   :  { %v1915_v28 = vsel %vm503_vm1, %v1871_v25, %v1895_v27 }
 0xc3a   :  { %v1923_v30 = vmul.f32 %v4116_v29, %v1915_v28  ;;  %v1893_v31 = vpop.permute.xlu1 %1892 }
 0xc3b   :  { %v1914_v32 = vsel %vm503_vm1, %v1869_v26, %v1893_v31 }
 0xc3c   :  { %v1922_v51 = vmul.f32 %v4119_v50, %v1914_v32  ;;  %v1951_v52 = vpop.permute.xlu0 %1950  ;;  %v5047_v58 = vadd.f32 %v1923_v30, %v1859_v60  ;;  %v1943_v60 = vmul.f32 %v4129_v33, %v4932_v38  ;;  %v4131_v50 = vld [vmem:[%s5466_s10 + $0x30] sm:$0xff]  ;;  %v4132_v38 = vld [vmem:[%s5464_s8 + $0x28] sm:$0xff] }
 0xc3e   :  { %v5049_v63 = vadd.f32 %v1922_v51, %v1858_v59  ;;  %v1949_v43 = vpop.permute.xlu1 %1948  ;;  %v1942_v59 = vmul.f32 %v4130_v34, %v4934_v42  ;;  %v4144_v34 = vld [vmem:[%s5467_s11 + $0x20] sm:$0xff] }
 0xc40   :  { %v2017_v44 = vpack.c.bf16 %v5047_v58, %v5049_v63  ;;  %v1975_v0 = vpop.permute.xlu0 %1974  ;;  %v4139_v58 = vld [vmem:[%s5464_s8 + $0x30] sm:$0xff] }
 0xc41   :  { %v1995_v2 = vsel %vm503_vm1, %v1951_v52, %v1975_v0 }
 0xc42   :  { %v2003_v5 = vmul.f32 %v4120_v45, %v1995_v2  ;;  %v1973_v39 = vpop.permute.xlu1 %1972 }
 0xc43   :  { %v1994_v53 = vsel %vm503_vm1, %v1949_v43, %v1973_v39 }
 0xc44   :  { %v2002_v8 = vmul.f32 %v4123_v7, %v1994_v53  ;;  %v1955_v9 = vpop.permute.xlu0 %1954  ;;  %v2011_v10 = vadd.f32 %v2003_v5, %v1939_v6  ;;  %v1861_v6 = vmul.f32 %v4133_v40, %v4944_v46  ;;  %v4134_v7 = vld [vmem:[%s5463_s7 + $0x20] sm:$0xff]  ;;  %v4136_v46 = vld [vmem:[%s5464_s8 + $0x38] sm:$0xff] }
 0xc46   :  { %v2010_v11 = vadd.f32 %v2002_v8, %v1938_v1  ;;  %v1953_v12 = vpop.permute.xlu1 %1952  ;;  %v1860_v8 = vmul.f32 %v4134_v7, %v4948_v47 }
 0xc48   :  { %v2021_v13 = vpack.c.bf16 %v2011_v10, %v2010_v11  ;;  %v1979_v15 = vpop.permute.xlu0 %1978 }
 0xc49   :  { %v1997_v55 = vsel %vm503_vm1, %v1955_v9, %v1979_v15  ;;  %v4135_v9 = vld [vmem:[%s5464_s8 + $0x20] sm:$0xff] }
 0xc4a   :  { %v2005_v57 = vmul.f32 %v4124_v4, %v1997_v55  ;;  %v1977_v16 = vpop.permute.xlu1 %1976  ;;  %3690 = vmatprep.subr.msk.bf16.mxu1 %vm616_vm2, %v2021_v13  ;;  %v2040_v35 = vsel %vm616_vm2, %v2021_v13, 0 }
 0xc4b   :  { %v1996_v17 = vsel %vm503_vm1, %v1953_v12, %v1977_v16  ;;  %3636 = vmatpush3.bf16.xpose.msra.mxu1 %v2040_v35 }
 0xc4c   :  { %v2004_v62 = vmul.f32 %v4127_v23, %v1996_v17  ;;  %v1959_v3 = vpop.permute.xlu0 %1958  ;;  %v2013_v24 = vadd.f32 %v2005_v57, %v1941_v20  ;;  %v4137_v17 = vld [vmem:[%s5463_s7 + $0x38] sm:$0xff]  ;;  %v4138_v20 = vld [vmem:[%s5463_s7 + $0x30] sm:$0xff] }
 0xc4d   :  { %v1863_v19 = vmul.f32 %v4137_v17, %v4952_v48  ;;  %v1862_v56 = vmul.f32 %v4138_v20, %v4956_v49 }
 0xc4e   :  { %v2012_v25 = vadd.f32 %v2004_v62, %v1940_v22  ;;  %v1957_v26 = vpop.permute.xlu1 %1956 }
 0xc50   :  { %v2022_v27 = vpack.c.bf16 %v2013_v24, %v2012_v25  ;;  %v1983_v28 = vpop.permute.xlu0 %1982 }
 0xc51   :  { %v1999_v29 = vsel %vm503_vm1, %v1959_v3, %v1983_v28  ;;  %v4140_v3 = vld [vmem:[%s5467_s11] sm:$0xff]  ;;  %v4142_v28 = vld [vmem:[%s5467_s11 + $0x8] sm:$0xff] }
 0xc52   :  { %v2007_v30 = vmul.f32 %v4128_v36, %v1999_v29  ;;  %v1981_v31 = vpop.permute.xlu1 %1980  ;;  %3691 = vmatprep.subr.msk.bf16.mxu1 %vm616_vm2, %v2022_v27  ;;  %v2043_v37 = vsel %vm616_vm2, %v2022_v27, 0 }
 0xc53   :  { %v1998_v32 = vsel %vm503_vm1, %v1957_v26, %v1981_v31  ;;  %3638 = vmatpush3.bf16.xpose.msra.mxu1 %v2043_v37  ;;  %v4141_v26 = vld [vmem:[%s5467_s11 + $0x18] sm:$0xff] }
 0xc54   :  { %v2006_v51 = vmul.f32 %v4131_v50, %v1998_v32  ;;  %v1875_v52 = vpop.permute.xlu0 %1874  ;;  %v2015_v43 = vadd.f32 %v2007_v30, %v1943_v60  ;;  %v4143_v30 = vld [vmem:[%s5467_s11 + $0x10] sm:$0xff] }
 0xc56   :  { %v2014_v0 = vadd.f32 %v2006_v51, %v1942_v59  ;;  %v1873_v2 = vpop.permute.xlu1 %1872 }
 0xc58   :  { %v2023_v45 = vpack.c.bf16 %v2015_v43, %v2014_v0  ;;  %v1899_v5 = vpop.permute.xlu0 %1898  ;;  %v4145_v43 = vld [vmem:[%s5467_s11 + $0x28] sm:$0xff] }
 0xc59   :  { %v1917_v39 = vsel %vm503_vm1, %v1875_v52, %v1899_v5  ;;  %v4147_v5 = vld [vmem:[%s5467_s11 + $0x38] sm:$0xff] }
 0xc5a   :  { %v1925_v53 = vmul.f32 %v4132_v38, %v1917_v39  ;;  %v1897_v14 = vpop.permute.xlu1 %1896  ;;  %3692 = vmatprep.subr.msk.bf16.mxu1 %vm616_vm2, %v2023_v45  ;;  %v2046_v42 = vsel %vm616_vm2, %v2023_v45, 0 }
 0xc5b   :  { %v1916_v1 = vsel %vm503_vm1, %v1873_v2, %v1897_v14  ;;  %3640 = vmatpush3.bf16.xpose.msra.mxu1 %v2046_v42  ;;  %v4146_v2 = vld [vmem:[%s5467_s11 + $0x30] sm:$0xff] }
 0xc5c   :  { %v1924_v10 = vmul.f32 %v4135_v9, %v1916_v1  ;;  %v1879_v11 = vpop.permute.xlu0 %1878  ;;  %v1933_v12 = vadd.f32 %v1925_v53, %v1861_v6 }
 0xc5e   :  { %v1932_v13 = vadd.f32 %v1924_v10, %v1860_v8  ;;  %v1877_v15 = vpop.permute.xlu1 %1876 }
 0xc60   :  { %v2018_v55 = vpack.c.bf16 %v1933_v12, %v1932_v13  ;;  %v1903_v4 = vpop.permute.xlu0 %1902 }
 0xc61   :  { %v1919_v57 = vsel %vm503_vm1, %v1879_v11, %v1903_v4 }
 0xc62   :  { %v1927_v16 = vmul.f32 %v4136_v46, %v1919_v57  ;;  %v1901_v35 = vpop.permute.xlu1 %1900  ;;  %3642 = vmatmul.mubr.msk.bf16.vlgmr.msra.gmra.mrb[28].mxu1 %vm616_vm2, %v2017_v44 }
 0xc63   :  { %v1918_v47 = vsel %vm503_vm1, %v1877_v15, %v1901_v35  ;;  %3645 = vmatprep.mubr.msk.bf16.mxu1 %vm616_vm2, %v2018_v55 }
 0xc64   :  { %v1926_v63 = vmul.f32 %v4139_v58, %v1918_v47  ;;  %v1935_v44 = vadd.f32 %v1927_v16, %v1863_v19 }
 0xc66   :  { %v1934_v22 = vadd.f32 %v1926_v63, %v1862_v56 }
 0xc68   :  { %v2019_v23 = vpack.c.bf16 %v1935_v44, %v1934_v22 }
 0xc6a   :  { %3646 = vmatmul.mubr.msk.bf16.gmra.mrb[32].mxu1 %vm616_vm2, %v2019_v23 }
 0xc6b   :  { %2675 = vmatprep.mubr.bf16.mxu1 %v4202_v18 }
 0xd35   :  { %v3643_v62 = vpop.f32.mrb[28].mxu1 }
 0xd36   :  { %v2082_v48 = vpop.f32.mrb[29].mxu1  ;;  %v2091_v31 = vadd.f32 %v4143_v30, %v3643_v62 }
 0xd37   :  { %v2083_v24 = vadd.f32 %v4140_v3, %v2082_v48  ;;  %v3644_v49 = vpop.f32.mrb[30].mxu1 }
 0xd38   :  { %v2085_v25 = vpop.f32.mrb[31].mxu1  ;;  %v2094_v27 = vadd.f32 %v4141_v26, %v3644_v49  ;;  %v2119_v51 = vsel %vm706_vm3, %v2091_v31, -inf }
 0xd39   :  { %v2086_v29 = vadd.f32 %v4142_v28, %v2085_v25  ;;  %v2113_v36 = vsel %vm706_vm3, %v2083_v24, -inf }
 0xd3a   :  { %2114 = vmax.xlane.f32.xlu1 %v2113_v36  ;;  %v2122_v33 = vsel %vm706_vm3, %v2094_v27, -inf }
 0xd3b   :  { %v2116_v37 = vsel %vm706_vm3, %v2086_v29, -inf }
 0xd3c   :  { %2117 = vmax.xlane.f32.xlu0 %v2116_v37 }
 0xd3d   :  { %v3647_v32 = vpop.f32.mrb[32].mxu1 }
 0xd3e   :  { %v2098_v60 = vpop.f32.mrb[33].mxu1  ;;  %2123 = vmax.xlane.f32.xlu1 %v2122_v33  ;;  %v2107_v45 = vadd.f32 %v4146_v2, %v3647_v32 }
 0xd3f   :  { %v2099_v59 = vadd.f32 %v4144_v34, %v2098_v60  ;;  %v3648_v50 = vpop.f32.mrb[34].mxu1 }
 0xd40   :  { %v2101_v52 = vpop.f32.mrb[35].mxu1  ;;  %2120 = vmax.xlane.f32.xlu0 %v2119_v51  ;;  %v2110_v39 = vadd.f32 %v4147_v5, %v3648_v50  ;;  %v2131_v14 = vsel %vm706_vm3, %v2107_v45, -inf }
 0xd41   :  { %v2102_v0 = vadd.f32 %v4145_v43, %v2101_v52  ;;  %v2125_v38 = vsel %vm706_vm3, %v2099_v59, -inf }
 0xd42   :  { %v2134_v42 = vsel %vm706_vm3, %v2110_v39, -inf }
 0xd43   :  { %v2128_v53 = vsel %vm706_vm3, %v2102_v0, -inf }
 0xd44   :  { %2126 = vmax.xlane.f32.xlu0 %v2125_v38  ;;  %2129 = vmax.xlane.f32.xlu1 %v2128_v53 }
 0xd48   :  { %2132 = vmax.xlane.f32.xlu0 %v2131_v14  ;;  %2135 = vmax.xlane.f32.xlu1 %v2134_v42 }
 0xdc7   :  { %v2115_v1 = vpop.xlane.xlu1 %2114 }
 0xdc8   :  { %v2137_v8 = vsub.f32 %v2083_v24, %v2115_v1 }
 0xdc9   :  { %v2118_v40 = vpop.xlane.xlu0 %2117 }
 0xdca   :  { %v2138_v6 = vsub.f32 %v2086_v29, %v2118_v40  ;;  %v2145_v15 = vmul.f32 1.442695, %v2137_v8 }
 0xdcb   :  { %v2124_v7 = vpop.xlane.xlu1 %2123 }
 0xdcc   :  { %v2140_v9 = vsub.f32 %v2094_v27, %v2124_v7  ;;  %v2147_v10 = vmul.f32 1.442695, %v2138_v6 }
 0xdcd   :  { %v2121_v11 = vpop.xlane.xlu0 %2120 }
 0xdce   :  { %v2151_v12 = vmul.f32 1.442695, %v2140_v9  ;;  %v2139_v13 = vsub.f32 %v2091_v31, %v2121_v11 }
 0xdd0   :  { %4050 = vpow2.f32 %v2151_v12  ;;  %v2149_v55 = vmul.f32 1.442695, %v2139_v13 }
 0xdd1   :  { %4052 = vpow2.f32 %v2147_v10  ;;  %v2127_v4 = vpop.xlane.xlu0 %2126  ;;  %v2130_v24 = vpop.xlane.xlu1 %2129 }
 0xdd2   :  { %4054 = vpow2.f32 %v2149_v55  ;;  %v2141_v57 = vsub.f32 %v2099_v59, %v2127_v4  ;;  %v2142_v26 = vsub.f32 %v2102_v0, %v2130_v24 }
 0xdd3   :  { %4056 = vpow2.f32 %v2145_v15 }
 0xdd4   :  { %v2153_v35 = vmul.f32 1.442695, %v2141_v57  ;;  %v2155_v28 = vmul.f32 1.442695, %v2142_v26 }
 0xdd5   :  { %v2133_v46 = vpop.xlane.xlu0 %2132  ;;  %v2136_v49 = vpop.xlane.xlu1 %2135 }
 0xdd6   :  { %v2143_v16 = vsub.f32 %v2107_v45, %v2133_v46  ;;  %v2144_v25 = vsub.f32 %v2110_v39, %v2136_v49 }
 0xdd8   :  { %v2157_v47 = vmul.f32 1.442695, %v2143_v16  ;;  %v2159_v27 = vmul.f32 1.442695, %v2144_v25  ;;  %v3909_v25 = vld [vmem:[#allocation4 + $0x78] sm:$0xff]  }
 0xdda   :  { %v5178_v17 = vpop.eup %4050  ;;  %4058 = vpow2.f32 %v2157_v47 }
 0xddb   :  { %v4053_v19 = vpop.eup %4052  ;;  %v2170_v20 = vsel %vm706_vm3, %v5178_v17, 0.0  ;;  %4060 = vpow2.f32 %v2153_v35 }
 0xddc   :  { %v5182_v56 = vpop.eup %4054  ;;  %2171 = vadd.xlane.f32.xlu1 %v2170_v20  ;;  %v2164_v44 = vsel %vm706_vm3, %v4053_v19, 0.0  ;;  %4062 = vpow2.f32 %v2159_v27  ;;  %v3902_v20 = vld [vmem:[#allocation4 + $0x40] sm:$0xff]  }
 0xddd   :  { %v2167_v58 = vsel %vm706_vm3, %v5182_v56, 0.0  ;;  %v4057_v63 = vpop.eup %4056  ;;  %4064 = vpow2.f32 %v2155_v28 }
 0xdde   :  { %2168 = vadd.xlane.f32.xlu0 %v2167_v58  ;;  %v2161_v22 = vsel %vm706_vm3, %v4057_v63, 0.0  ;;  %v3904_v58 = vld [vmem:[#allocation4 + $0x50] sm:$0xff]  }
 0xde0   :  { %2165 = vadd.xlane.f32.xlu1 %v2164_v44  ;;  %v3906_v44 = vld [vmem:[#allocation4 + $0x60] sm:$0xff]  }
 0xde2   :  { %2162 = vadd.xlane.f32.xlu0 %v2161_v22  ;;  %v3907_v22 = vld [vmem:[#allocation4 + $0x68] sm:$0xff]  }
 0xde4   :  { %v5188_v23 = vpop.eup %4058 }
 0xde5   :  { %v2179_v62 = vsel %vm706_vm3, %v5188_v23, 0.0  ;;  %v5192_v48 = vpop.eup %4060 }
 0xde6   :  { %2180 = vadd.xlane.f32.xlu0 %v2179_v62  ;;  %v2173_v3 = vsel %vm706_vm3, %v5192_v48, 0.0  ;;  %v4063_v29 = vpop.eup %4062 }
 0xde7   :  { %v2182_v36 = vsel %vm706_vm3, %v4063_v29, 0.0  ;;  %v4065_v30 = vpop.eup %4064 }
 0xde8   :  { %v2176_v31 = vsel %vm706_vm3, %v4065_v30, 0.0 }
 0xdea   :  { %2174 = vadd.xlane.f32.xlu0 %v2173_v3 }
 0xdf1   :  { %3742 = vrot.lane.b32.xlu1 %v4882_v54, %s4200_s2 }
 0xe00   :  { %3737 = vrot.lane.b32.xlu0 %v4882_v54, %s4205_s29 }
 0xe15   :  { %2183 = vadd.xlane.f32.xlu1 %v2182_v36 }
 0xe19   :  { %2177 = vadd.xlane.f32.xlu1 %v2176_v31 }
 0xe2a   :  { %3747 = vrot.lane.b32.xlu1 %v4882_v54, %s4206_s15 }
 0xe69   :  { %v2172_v37 = vpop.xlane.xlu1 %2171 }
 0xe6b   :  { %v2169_v32 = vpop.xlane.xlu0 %2168 }
 0xe6d   :  { %v2166_v33 = vpop.xlane.xlu1 %2165 }
 0xe6e   :  { %4066 = vrcp.f32 %v2166_v33 }
 0xe6f   :  { %v2163_v60 = vpop.xlane.xlu0 %2162 }
 0xe70   :  { %4068 = vrcp.f32 %v2163_v60 }
 0xe71   :  { %v3743_v51 = vpop.permute.xlu1 %3742  ;;  %4070 = vrcp.f32 %v2169_v32 }
 0xe72   :  { %v3745_v45 = vunpack.i.h.bf16 %v3743_v51  ;;  %v3744_v5 = vunpack.i.l.bf16 %v3743_v51  ;;  %4072 = vrcp.f32 %v2172_v37 }
 0xe73   :  { %v2181_v34 = vpop.xlane.xlu0 %2180 }
 0xe74   :  { %v2207_v14 = vpack.c.bf16 %v3745_v45, %v3744_v5 }
 0xe77   :  { %v2175_v59 = vpop.xlane.xlu0 %2174 }
 0xe78   :  { %v4067_v50 = vpop.eup %4066  ;;  %4074 = vrcp.f32 %v2175_v59 }
 0xe79   :  { %v2194_v2 = vmul.f32 %v4067_v50, %v4053_v19 }
 0xe7a   :  { %v4069_v52 = vpop.eup %4068 }
 0xe7b   :  { %v3738_v43 = vpop.permute.xlu0 %3737  ;;  %v2193_v0 = vmul.f32 %v4069_v52, %v4057_v63  ;;  %v4071_v40 = vpop.eup %4070  ;;  %v3905_v63 = vld [vmem:[#allocation4 + $0x58] sm:$0xff]  }
 0xe7c   :  { %v3740_v39 = vunpack.i.h.bf16 %v3738_v43  ;;  %v3739_v38 = vunpack.i.l.bf16 %v3738_v43  ;;  %v4073_v9 = vpop.eup %4072  ;;  %v2195_v10 = vmul.f32 %v4071_v40, %v5182_v56  ;;  %v3903_v56 = vld [vmem:[#allocation4 + $0x48] sm:$0xff]   ;;  %v3924_v40 = vld [vmem:[%s5461_s5 + $0x144] ss:$16 sps:$4 sm:$0xff]  }
 0xe7d   :  { %v2201_v53 = vpack.c.bf16 %v2194_v2, %v2193_v0  ;;  %v2196_v13 = vmul.f32 %v4073_v9, %v5178_v17 }
 0xe7e   :  { %v2206_v54 = vpack.c.bf16 %v3740_v39, %v3739_v38  ;;  %v3910_v39 = vld [vmem:[%s5461_s5 + $0x100] ss:$16 sps:$4 sm:$0xff]   ;;  %v3912_v38 = vld [vmem:[%s5461_s5 + $0x104] ss:$16 sps:$4 sm:$0xff]  }
 0xe7f   :  { %3657 = vmatprep.mubr.msk.bf16.mxu0 %vm706_vm3, %v2201_v53  ;;  %v2202_v55 = vpack.c.bf16 %v2196_v13, %v2195_v10  ;;  %v3913_v53 = vld [vmem:[%s5461_s5 + $0x108] ss:$16 sps:$4 sm:$0xff]   ;;  %2643 = vmatprep.subr.bf16.mxu1 %v3912_v38 }
 0xe80   :  { %3651 = vmatprep.subr.bf16.mxu0 %v2206_v54  ;;  %2644 = vmatpush1.bf16.msra.mxu1 %v3910_v39  ;;  %v3968_v39 = vld [vmem:[%s5462_s6 + $0xe8] sm:$0xff]  }
 0xe81   :  { %3652 = vmatpush3.bf16.msra.mxu0 %v2206_v54  ;;  %v3915_v54 = vld [vmem:[%s5461_s5 + $0x10c] ss:$16 sps:$4 sm:$0xff]  }
 0xe82   :  { %3653 = vmatprep.subr.bf16.mxu0 %v2207_v14  ;;  %v4075_v12 = vpop.eup %4074  ;;  %v3969_v38 = vld [vmem:[%s5462_s6 + $0xa8] sm:$0xff]  }
 0xe83   :  { %v2197_v57 = vmul.f32 %v4075_v12, %v5192_v48 }
 0xe85   :  { %3654 = vmatpush3.bf16.msra.mxu0 %v2207_v14  ;;  %v3921_v14 = vld [vmem:[%s5461_s5 + $0x12c] ss:$16 sps:$4 sm:$0xff]  }
 0xea2   :  { %v2184_v42 = vpop.xlane.xlu1 %2183 }
 0xea6   :  { %v2178_v1 = vpop.xlane.xlu1 %2177 }
 0xea7   :  { %4076 = vrcp.f32 %v2178_v1  ;;  %v3919_v1 = vld [vmem:[%s5461_s5 + $0x128] ss:$16 sps:$4 sm:$0xff]  }
 0xea8   :  { %4078 = vrcp.f32 %v2184_v42  ;;  %v3916_v42 = vld [vmem:[%s5461_s5 + $0x120] ss:$16 sps:$4 sm:$0xff]  }
 0xea9   :  { %4080 = vrcp.f32 %v2181_v34 }
 0xeaa   :  { %v3748_v6 = vpop.permute.xlu1 %3747 }
 0xeab   :  { %v3750_v7 = vunpack.i.h.bf16 %v3748_v6  ;;  %v3749_v8 = vunpack.i.l.bf16 %v3748_v6  ;;  %v3927_v6 = vld [vmem:[%s5461_s5 + $0x14c] ss:$16 sps:$4 sm:$0xff]  }
 0xead   :  { %v2208_v11 = vpack.c.bf16 %v3750_v7, %v3749_v8  ;;  %v3922_v7 = vld [vmem:[%s5461_s5 + $0x140] ss:$16 sps:$4 sm:$0xff]   ;;  %v3925_v8 = vld [vmem:[%s5461_s5 + $0x148] ss:$16 sps:$4 sm:$0xff]  }
 0xeaf   :  { %3655 = vmatprep.subr.bf16.mxu0 %v2208_v11 }
 0xeb0   :  { %3656 = vmatpush3.bf16.msra.mxu0 %v2208_v11 }
 0xeb1   :  { %v4077_v15 = vpop.eup %4076  ;;  %3665 = vmatprep.subr.bf16.mxu0 %v4203_v21 }
 0xeb2   :  { %v4079_v4 = vpop.eup %4078  ;;  %v2198_v46 = vmul.f32 %v4077_v15, %v4065_v30 }
 0xeb3   :  { %3658 = vmatmul.mubr.msk.bf16.vlgmr.msra.gmra.mrb[20].mxu0 %vm706_vm3, %v2202_v55  ;;  %v4081_v16 = vpop.eup %4080  ;;  %v2200_v47 = vmul.f32 %v4079_v4, %v4063_v29 }
 0xeb4   :  { %v2203_v35 = vpack.c.bf16 %v2198_v46, %v2197_v57  ;;  %v2199_v19 = vmul.f32 %v4081_v16, %v5188_v23  ;;  %3666 = vmatpush3.bf16.msra.mxu0 %v3902_v20  ;;  %v3908_v23 = vld [vmem:[#allocation4 + $0x70] sm:$0xff]   ;;  %v3931_v46 = vld [vmem:[%s5461_s5 + $0x168] ss:$16 sps:$4 sm:$0xff]   ;;  %v3945_v20 = vld [vmem:[%s5461_s5 + $0x1ac] ss:$16 sps:$4 sm:$0xff]  }
 0xeb5   :  { %3667 = vmatprep.subr.bf16.mxu0 %v4203_v21  ;;  %v3930_v57 = vld [vmem:[%s5461_s5 + $0x164] ss:$16 sps:$4 sm:$0xff]  }
 0xeb6   :  { %3661 = vmatprep.mubr.msk.bf16.mxu0 %vm706_vm3, %v2203_v35  ;;  %v2204_v17 = vpack.c.bf16 %v2200_v47, %v2199_v19  ;;  %v3936_v16 = vld [vmem:[%s5461_s5 + $0x184] ss:$16 sps:$4 sm:$0xff]   ;;  %v3939_v35 = vld [vmem:[%s5461_s5 + $0x18c] ss:$16 sps:$4 sm:$0xff]   ;;  %v3934_v47 = vld [vmem:[%s5461_s5 + $0x180] ss:$16 sps:$4 sm:$0xff]  }
 0xeb7   :  { %v3937_v19 = vld [vmem:[%s5461_s5 + $0x188] ss:$16 sps:$4 sm:$0xff]  }
 0xeb8   :  { %3668 = vmatpush3.bf16.msra.mxu0 %v3903_v56  ;;  %v3940_v56 = vld [vmem:[%s5461_s5 + $0x1a0] ss:$16 sps:$4 sm:$0xff]  }
 0xeb9   :  { %3669 = vmatprep.subr.bf16.mxu0 %v4203_v21 }
 0xebb   :  { %3662 = vmatmul.mubr.msk.bf16.gmra.mrb[24].mxu0 %vm706_vm3, %v2204_v17  ;;  %v3942_v17 = vld [vmem:[%s5461_s5 + $0x1a4] ss:$16 sps:$4 sm:$0xff]  }
 0xebc   :  { %3681 = vmatprep.mubr.msk.bf16.mxu0 %vm4204_vm0, %v4203_v21  ;;  %3670 = vmatpush3.bf16.msra.mxu0 %v3904_v58  ;;  %v3943_v58 = vld [vmem:[%s5461_s5 + $0x1a8] ss:$16 sps:$4 sm:$0xff]  }
 0xebd   :  { %3671 = vmatprep.subr.bf16.mxu0 %v4203_v21 }
 0xec0   :  { %3672 = vmatpush3.bf16.msra.mxu0 %v3905_v63  ;;  %v3948_v63 = vld [vmem:[%s5461_s5 + $0x1c4] ss:$16 sps:$4 sm:$0xff]  }
 0xec1   :  { %3673 = vmatprep.subr.bf16.mxu0 %v4203_v21 }
 0xec4   :  { %3674 = vmatpush3.bf16.msra.mxu0 %v3906_v44  ;;  %v3951_v44 = vld [vmem:[%s5461_s5 + $0x1cc] ss:$16 sps:$4 sm:$0xff]  }
 0xec5   :  { %3675 = vmatprep.subr.bf16.mxu0 %v4203_v21 }
 0xec8   :  { %3676 = vmatpush3.bf16.msra.mxu0 %v3907_v22  ;;  %v3946_v22 = vld [vmem:[%s5461_s5 + $0x1c0] ss:$16 sps:$4 sm:$0xff]  }
 0xec9   :  { %3677 = vmatprep.subr.bf16.mxu0 %v4203_v21 }
 0xecc   :  { %3678 = vmatpush3.bf16.msra.mxu0 %v3908_v23  ;;  %v3949_v23 = vld [vmem:[%s5461_s5 + $0x1c8] ss:$16 sps:$4 sm:$0xff]  }
 0xecd   :  { %3679 = vmatprep.subr.bf16.mxu0 %v4203_v21 }
 0xed0   :  { %3680 = vmatpush3.bf16.msra.mxu0 %v3909_v25 }
 0xed1   :  { %2686 = vmatprep.subr.bf16.mxu0 %v3915_v54  ;;  %v3971_v54 = vld [vmem:[%s5462_s6 + $0xb0] sm:$0xff]  }
 0xf86   :  { %v3659_v62 = vpop.f32.mrb[20].mxu0 }
 0xf87   :  { %v2255_v48 = vpop.f32.mrb[21].mxu0 }
 0xf88   :  { %v3660_v3 = vpop.f32.mrb[22].mxu0 }
 0xf89   :  { %v3751_v24 = vpack.i.bf16 %v3660_v3, %v3659_v62  ;;  %v2258_v49 = vpop.f32.mrb[23].mxu0  ;;  %v3952_v62 = vld [vmem:[%s5461_s5 + $0x1e0] ss:$16 sps:$4 sm:$0xff]   ;;  %v3955_v3 = vld [vmem:[%s5461_s5 + $0x1e8] ss:$16 sps:$4 sm:$0xff]  }
 0xf8b   :  { %3752 = vrot.lane.b32.xlu0 %v3751_v24, %s4206_s15  ;;  %v3957_v24 = vld [vmem:[%s5461_s5 + $0x1ec] ss:$16 sps:$4 sm:$0xff]  }
 0xf8e   :  { %v3663_v26 = vpop.f32.mrb[24].mxu0 }
 0xf8f   :  { %v2271_v27 = vpop.f32.mrb[25].mxu0 }
 0xf90   :  { %v3664_v28 = vpop.f32.mrb[26].mxu0 }
 0xf91   :  { %v3761_v29 = vpack.i.bf16 %v3664_v28, %v3663_v26  ;;  %v2274_v36 = vpop.f32.mrb[27].mxu0 }
 0xf92   :  { %v3756_v30 = vpack.i.bf16 %v2274_v36, %v2271_v27 }
 0xf93   :  { %3762 = vrot.lane.b32.xlu0 %v3761_v29, %s4205_s29 }
 0xf94   :  { %3757 = vrot.lane.b32.xlu1 %v3756_v30, %s4200_s2 }
 0xffd   :  { %v3753_v31 = vpop.permute.xlu0 %3752 }
 0xffe   :  { %v3755_v37 = vunpack.i.h.bf16 %v3753_v31  ;;  %v3754_v32 = vunpack.i.l.bf16 %v3753_v31 }
0x1000   :  { %v2310_v59 = vsel %vm616_vm2, %v2255_v48, %v3754_v32  ;;  %v2311_v50 = vsel %vm616_vm2, %v2258_v49, %v3755_v37  ;;  %v3954_v48 = vld [vmem:[%s5461_s5 + $0x1e4] ss:$16 sps:$4 sm:$0xff]   ;;  %v3277_v37 = vld [vmem:[%s5460_s4 + $0x1] ss:$0 sm:$0xff] }
0x1005   :  { %v3763_v21 = vpop.permute.xlu0 %3762 }
0x1006   :  { %v3758_v33 = vpop.permute.xlu1 %3757  ;;  %v3765_v51 = vunpack.i.h.bf16 %v3763_v21  ;;  %v3764_v52 = vunpack.i.l.bf16 %v3763_v21 }
0x1007   :  { %v3760_v60 = vunpack.i.h.bf16 %v3758_v33  ;;  %v3759_v34 = vunpack.i.l.bf16 %v3758_v33 }
0x1009   :  { %v2313_v43 = vsel %vm706_vm3, %v2311_v50, %v3760_v60  ;;  %v2312_v0 = vsel %vm706_vm3, %v2310_v59, %v3759_v34  ;;  %v3958_v34 = vld [vmem:[%s5462_s6 + $0xc0] sm:$0xff]   ;;  %v3960_v50 = vld [vmem:[%s5462_s6 + $0xc8] sm:$0xff]  }
0x100a   :  { %v2315_v2 = vsel %vm908_vm4, %v2313_v43, %v3765_v51  ;;  %v2314_v45 = vsel %vm908_vm4, %v2312_v0, %v3764_v52  ;;  %v3959_v59 = vld [vmem:[%s5462_s6 + $0x80] sm:$0xff]   ;;  %v3961_v51 = vld [vmem:[%s5462_s6 + $0x88] sm:$0xff]   ;;  %v3962_v52 = vld [vmem:[%s5462_s6 + $0xd0] sm:$0xff]  }
0x100b   :  { %v2316_v5 = vpack.c.bf16 %v2315_v2, %v2314_v45  ;;  %v3963_v43 = vld [vmem:[%s5462_s6 + $0x90] sm:$0xff]   ;;  %v3964_v0 = vld [vmem:[%s5462_s6 + $0xd8] sm:$0xff]   ;;  %v3966_v45 = vld [vmem:[%s5462_s6 + $0xe0] sm:$0xff]  }
0x100c   :  { %v3965_v2 = vld [vmem:[%s5462_s6 + $0x98] sm:$0xff]  }
0x100d   :  { %3682 = vmatmul.mubr.bf16.vlgmr.msra.gmra.mrb[28].mxu0 %v2316_v5  ;;  %v3967_v5 = vld [vmem:[%s5462_s6 + $0xa0] sm:$0xff]  }
0x100e   :  { %2718 = vmatprep.mubr.bf16.mxu0 %v4202_v18  ;;  %v3918_v18 = vld [vmem:[%s5461_s5 + $0x124] ss:$16 sps:$4 sm:$0xff]   ;;  %2687 = vmatpush1.bf16.msra.mxu0 %v3913_v53 }
0x100f   :  { %2645 = vmatprep.subr.bf16.mxu1 %v3918_v18  ;;  %2688 = vmatprep.subr.bf16.mxu0 %v3921_v14  ;;  %v3970_v53 = vld [vmem:[%s5462_s6 + $0xf0] sm:$0xff]   ;;  %v3972_v18 = vld [vmem:[%s5462_s6 + $0xf8] sm:$0xff]  }
0x1010   :  { %2646 = vmatpush1.bf16.msra.mxu1 %v3916_v42  ;;  %v3973_v14 = vld [vmem:[%s5462_s6 + $0xb8] sm:$0xff]  }
0x1011   :  { %2647 = vmatprep.subr.bf16.mxu1 %v3924_v40 }
0x1012   :  { %2689 = vmatpush1.bf16.msra.mxu0 %v3919_v1 }
0x1013   :  { %2690 = vmatprep.subr.bf16.mxu0 %v3927_v6 }
0x1014   :  { %2648 = vmatpush1.bf16.msra.mxu1 %v3922_v7 }
0x1015   :  { %2649 = vmatprep.subr.bf16.mxu1 %v3930_v57 }
0x1016   :  { %2691 = vmatpush1.bf16.msra.mxu0 %v3925_v8 }
0x10e0   :  { %v2416_v9 = vpop.f32.mrb[28].mxu0 }
0x10e1   :  { %v5269_v10 = vadd.f32 %v2416_v9, %v4855_v41  ;;  %v3683_v11 = vpop.f32.mrb[29].mxu0  ;;  %v3933_v41 = vld [vmem:[%s5461_s5 + $0x16c] ss:$16 sps:$4 sm:$0xff]  }
0x10e2   :  { %v2419_v12 = vpop.f32.mrb[30].mxu0  ;;  %2692 = vmatprep.subr.bf16.mxu0 %v3933_v41 }
0x10e3   :  { %v5272_v13 = vadd.f32 %v2419_v12, %v4858_v61  ;;  %v3684_v15 = vpop.f32.mrb[31].mxu0  ;;  %v2427_v55 = vmul.f32 %v5269_v10, %v5269_v10  ;;  %v3928_v61 = vld [vmem:[%s5461_s5 + $0x160] ss:$16 sps:$4 sm:$0xff]   ;;  %2693 = vmatpush1.bf16.msra.mxu0 %v3931_v46 }
0x10e4   :  { %2650 = vmatpush1.bf16.msra.mxu1 %v3928_v61  ;;  %2694 = vmatprep.subr.bf16.mxu0 %v3939_v35 }
0x10e5   :  { %2429 = vadd.xlane.f32.xlu1 %v2427_v55  ;;  %v2428_v4 = vmul.f32 %v5272_v13, %v5272_v13  ;;  %2651 = vmatprep.subr.bf16.mxu1 %v3936_v16 }
0x10e7   :  { %2431 = vadd.xlane.f32.xlu0 %v2428_v4  ;;  %2695 = vmatpush1.bf16.msra.mxu0 %v3937_v19 }
0x10e8   :  { %2652 = vmatpush1.bf16.msra.mxu1 %v3934_v47  ;;  %2696 = vmatprep.subr.bf16.mxu0 %v3945_v20 }
0x10e9   :  { %2653 = vmatprep.subr.bf16.mxu1 %v3942_v17 }
0x10eb   :  { %2697 = vmatpush1.bf16.msra.mxu0 %v3943_v58 }
0x10ec   :  { %2654 = vmatpush1.bf16.msra.mxu1 %v3940_v56  ;;  %2698 = vmatprep.subr.bf16.mxu0 %v3951_v44 }
0x10ed   :  { %2655 = vmatprep.subr.bf16.mxu1 %v3948_v63 }
0x10ef   :  { %2699 = vmatpush1.bf16.msra.mxu0 %v3949_v23 }
0x10f0   :  { %2656 = vmatpush1.bf16.msra.mxu1 %v3946_v22  ;;  %2700 = vmatprep.subr.bf16.mxu0 %v3957_v24 }
0x10f1   :  { %2657 = vmatprep.subr.bf16.mxu1 %v3954_v48 }
0x10f3   :  { %2701 = vmatpush1.bf16.msra.mxu0 %v3955_v3 }
0x10f4   :  { %2658 = vmatpush1.bf16.msra.mxu1 %v3952_v62 }
0x10f5   :  { %3501 = vmatprep.subr.bf16.mxu1 %v3958_v34 }
0x1172   :  { %v2430_v49 = vpop.xlane.xlu1 %2429 }
0x1173   :  { %v2433_v25 = vmul.f32 0.0078125, %v2430_v49 }
0x1174   :  { %v2432_v26 = vpop.xlane.xlu0 %2431 }
0x1175   :  { %v2435_v27 = vadd.f32 1e-05, %v2433_v25  ;;  %v2434_v28 = vmul.f32 0.0078125, %v2432_v26  ;;  %v3974_v26 = vld [vmem:[%s5469_s13 + $0x40] sm:$0xff]  }
0x1176   :  { %3523 = vmatprep.subr.bf16.mxu0 %v3974_v26 }
0x1177   :  { %4082 = vrsqrt.f32 %v2435_v27  ;;  %v2436_v29 = vadd.f32 1e-05, %v2434_v28  ;;  %v3975_v27 = vld [vmem:[%s5469_s13] sm:$0xff]   ;;  %v3976_v28 = vld [vmem:[%s5469_s13 + $0x48] sm:$0xff]  }
0x1179   :  { %4084 = vrsqrt.f32 %v2436_v29  ;;  %v3977_v29 = vld [vmem:[%s5469_s13 + $0x8] sm:$0xff]  }
0x1181   :  { %v4083_v36 = vpop.eup %4082 }
0x1182   :  { %v2439_v30 = vmul.f32 %v4083_v36, %v5269_v10  ;;  %v3978_v36 = vld [vmem:[%s5469_s13 + $0x50] sm:$0xff]  }
0x1183   :  { %v4085_v31 = vpop.eup %4084 }
0x1184   :  { %v2440_v32 = vmul.f32 %v4085_v31, %v5272_v13  ;;  %v2447_v21 = vmul.f32 %v3277_v37, %v2439_v30  ;;  %v3979_v30 = vld [vmem:[%s5469_s13 + $0x10] sm:$0xff]   ;;  %v3980_v31 = vld [vmem:[%s5469_s13 + $0x58] sm:$0xff]  }
0x1186   :  { %v2448_v33 = vmul.f32 %v3277_v37, %v2440_v32  ;;  %v3981_v37 = vld [vmem:[%s5469_s13 + $0x18] sm:$0xff]   ;;  %v3982_v32 = vld [vmem:[%s5469_s13 + $0x60] sm:$0xff]  }
0x1188   :  { %v2449_v60 = vpack.c.bf16 %v2448_v33, %v2447_v21  ;;  %v3983_v21 = vld [vmem:[%s5469_s13 + $0x20] sm:$0xff]  }
0x118a   :  { %2676 = vmatmul.mubr.bf16.vlgmr.msra.gmra.mrb[36].mxu1 %v2449_v60  ;;  %2719 = vmatmul.mubr.bf16.vlgmr.msra.gmra.mrb[32].mxu0 %v2449_v60 }
0x118b   :  { %3502 = vmatpush3.bf16.msra.mxu1 %v3959_v59  ;;  %3524 = vmatpush3.bf16.xpose.msra.mxu0 %v3975_v27 }
0x118c   :  { %3503 = vmatprep.subr.bf16.mxu1 %v3960_v50  ;;  %3525 = vmatprep.subr.bf16.mxu0 %v3976_v28 }
0x118f   :  { %3504 = vmatpush3.bf16.msra.mxu1 %v3961_v51 }
0x1190   :  { %3505 = vmatprep.subr.bf16.mxu1 %v3962_v52 }
0x1193   :  { %3506 = vmatpush3.bf16.msra.mxu1 %v3963_v43  ;;  %3526 = vmatpush3.bf16.xpose.msra.mxu0 %v3977_v29 }
0x1194   :  { %3507 = vmatprep.subr.bf16.mxu1 %v3964_v0  ;;  %3527 = vmatprep.subr.bf16.mxu0 %v3978_v36 }
0x1197   :  { %3508 = vmatpush3.bf16.msra.mxu1 %v3965_v2 }
0x1198   :  { %3509 = vmatprep.subr.bf16.mxu1 %v3966_v45  ;;  %v3984_v45 = vld [vmem:[%s5469_s13 + $0x68] sm:$0xff]  }
0x119b   :  { %3510 = vmatpush3.bf16.msra.mxu1 %v3967_v5  ;;  %3528 = vmatpush3.bf16.xpose.msra.mxu0 %v3979_v30  ;;  %v3985_v5 = vld [vmem:[%s5469_s13 + $0x28] sm:$0xff]  }
0x119c   :  { %3511 = vmatprep.subr.bf16.mxu1 %v3968_v39  ;;  %3529 = vmatprep.subr.bf16.mxu0 %v3980_v31  ;;  %v3988_v39 = vld [vmem:[%s5469_s13 + $0x78] sm:$0xff]  }
0x119f   :  { %3512 = vmatpush3.bf16.msra.mxu1 %v3969_v38  ;;  %v3989_v38 = vld [vmem:[%s5469_s13 + $0x38] sm:$0xff]  }
0x11a0   :  { %3513 = vmatprep.subr.bf16.mxu1 %v3970_v53 }
0x11a3   :  { %3514 = vmatpush3.bf16.msra.mxu1 %v3971_v54  ;;  %3530 = vmatpush3.bf16.xpose.msra.mxu0 %v3981_v37 }
0x11a4   :  { %3515 = vmatprep.subr.bf16.mxu1 %v3972_v18  ;;  %3531 = vmatprep.subr.bf16.mxu0 %v3982_v32 }
0x11a7   :  { %3516 = vmatpush3.bf16.msra.mxu1 %v3973_v14 }
0x11ab   :  { %3532 = vmatpush3.bf16.xpose.msra.mxu0 %v3983_v21 }
0x11ac   :  { %3533 = vmatprep.subr.bf16.mxu0 %v3984_v45 }
0x11b3   :  { %3534 = vmatpush3.bf16.xpose.msra.mxu0 %v3985_v5 }
0x125d   :  { %v2677_v42 = vpop.f32.mrb[36].mxu1  ;;  %v2720_v1 = vpop.f32.mrb[32].mxu0 }
0x125e   :  { %v3342_v40 = vmul.f32 -1.442695, %v2677_v42  ;;  %v2679_v6 = vpop.f32.mrb[37].mxu1  ;;  %v2722_v7 = vpop.f32.mrb[33].mxu0 }
0x125f   :  { %v3343_v8 = vmul.f32 -1.442695, %v2679_v6  ;;  %v2681_v9 = vpop.f32.mrb[38].mxu1  ;;  %v2724_v11 = vpop.f32.mrb[34].mxu0 }
0x1260   :  { %4086 = vpow2.f32 %v3342_v40  ;;  %v3344_v12 = vmul.f32 -1.442695, %v2681_v9  ;;  %v2683_v15 = vpop.f32.mrb[39].mxu1  ;;  %v2726_v55 = vpop.f32.mrb[35].mxu0 }
0x1261   :  { %4088 = vpow2.f32 %v3343_v8  ;;  %v3345_v4 = vmul.f32 -1.442695, %v2683_v15  ;;  %v3394_v8 = vld [vmem:[%s5468_s12] ss:$0 sm:$0xff] }
0x1262   :  { %4090 = vpow2.f32 %v3344_v12 }
0x1263   :  { %4092 = vpow2.f32 %v3345_v4 }
0x126a   :  { %v4087_v57 = vpop.eup %4086 }
0x126b   :  { %v4089_v41 = vpop.eup %4088  ;;  %v2741_v61 = vadd.f32 1.0, %v4087_v57 }
0x126c   :  { %v4091_v46 = vpop.eup %4090  ;;  %v2742_v16 = vadd.f32 1.0, %v4089_v41 }
0x126d   :  { %v4093_v35 = vpop.eup %4092  ;;  %4094 = vrcp.f32 %v2741_v61  ;;  %v2743_v47 = vadd.f32 1.0, %v4091_v46 }
0x126e   :  { %4096 = vrcp.f32 %v2742_v16  ;;  %v2744_v19 = vadd.f32 1.0, %v4093_v35 }
0x126f   :  { %4098 = vrcp.f32 %v2743_v47 }
0x1270   :  { %4100 = vrcp.f32 %v2744_v19 }
0x1277   :  { %v4095_v17 = vpop.eup %4094 }
0x1278   :  { %v4097_v20 = vpop.eup %4096  ;;  %v2753_v56 = vmul.f32 %v4095_v17, %v2677_v42 }
0x1279   :  { %v4099_v58 = vpop.eup %4098  ;;  %v2754_v63 = vmul.f32 %v4097_v20, %v2679_v6 }
0x127a   :  { %v4101_v44 = vpop.eup %4100  ;;  %v2757_v22 = vmul.f32 %v2753_v56, %v2720_v1  ;;  %v2755_v23 = vmul.f32 %v4099_v58, %v2681_v9 }
0x127b   :  { %v2758_v62 = vmul.f32 %v2754_v63, %v2722_v7  ;;  %v2756_v48 = vmul.f32 %v4101_v44, %v2683_v15 }
0x127c   :  { %v2759_v3 = vmul.f32 %v2755_v23, %v2724_v11 }
0x127d   :  { %v2760_v24 = vmul.f32 %v2756_v48, %v2726_v55 }
0x127e   :  { %v2761_v49 = vpack.c.bf16 %v2759_v3, %v2757_v22 }
0x127f   :  { %v2762_v25 = vpack.c.bf16 %v2760_v24, %v2758_v62 }
0x1281   :  { %2924 = vmatprep.mubr.bf16.mxu1 %v2762_v25 }
0x1282   :  { %2925 = vmatmul.mubr.bf16.vlgmr.msra.gmra.mrb[40].mxu1 %v2761_v49 }
0x1355   :  { %v3517_v33 = vpop.f32.mrb[40].mxu1 }
0x1356   :  { %v3518_v60 = vpop.f32.mrb[41].mxu1 }
0x1357   :  { %v3519_v34 = vadd.f32 %v3518_v60, %v3517_v33  ;;  %v3520_v59 = vpop.f32.mrb[42].mxu1 }
0x1358   :  { %v3521_v50 = vpop.f32.mrb[43].mxu1 }
0x1359   :  { %v2933_v51 = vadd.f32 %v3519_v34, %v5269_v10  ;;  %v3522_v52 = vadd.f32 %v3521_v50, %v3520_v59  ;;  %v3986_v10 = vld [vmem:[%s5469_s13 + $0x70] sm:$0xff]  }
0x135a   :  { %3535 = vmatprep.subr.bf16.mxu0 %v3986_v10 }
0x135b   :  { %v2934_v43 = vadd.f32 %v3522_v52, %v5272_v13  ;;  %v2936_v0 = vmul.f32 %v2933_v51, %v2933_v51  ;;  %v3987_v13 = vld [vmem:[%s5469_s13 + $0x30] sm:$0xff]  }
0x135c   :  { %3536 = vmatpush3.bf16.xpose.msra.mxu0 %v3987_v13 }
0x135d   :  { %2938 = vadd.xlane.f32.xlu0 %v2936_v0  ;;  %v2937_v2 = vmul.f32 %v2934_v43, %v2934_v43  ;;  %3537 = vmatprep.subr.bf16.mxu0 %v3988_v39 }
0x135f   :  { %2940 = vadd.xlane.f32.xlu1 %v2937_v2 }
0x1364   :  { %3538 = vmatpush3.bf16.xpose.msra.mxu0 %v3989_v38 }
0x13ea   :  { %v2939_v53 = vpop.xlane.xlu0 %2938 }
0x13eb   :  { %v2942_v54 = vmul.f32 0.0078125, %v2939_v53 }
0x13ec   :  { %v2941_v18 = vpop.xlane.xlu1 %2940 }
0x13ed   :  { %v2944_v14 = vadd.f32 1e-05, %v2942_v54  ;;  %v2943_v42 = vmul.f32 0.0078125, %v2941_v18 }
0x13ef   :  { %4102 = vrsqrt.f32 %v2944_v14  ;;  %v2945_v1 = vadd.f32 1e-05, %v2943_v42 }
0x13f1   :  { %4104 = vrsqrt.f32 %v2945_v1 }
0x13f9   :  { %v4103_v40 = vpop.eup %4102 }
0x13fa   :  { %v2948_v6 = vmul.f32 %v4103_v40, %v2933_v51 }
0x13fb   :  { %v4105_v7 = vpop.eup %4104 }
0x13fc   :  { %v2949_v9 = vmul.f32 %v4105_v7, %v2934_v43  ;;  %v2956_v11 = vmul.f32 %v3394_v8, %v2948_v6 }
0x13fe   :  { %v2957_v12 = vmul.f32 %v3394_v8, %v2949_v9 }
0x1400   :  { %v2958_v15 = vpack.c.bf16 %v2957_v12, %v2956_v11 }
0x1402   :  { %3539 = vmatprep.mubr.bf16.mxu0 %v2958_v15 }
0x1403   :  { %3540 = vmatmul.mubr.bf16.vlgmr.msra.gmra.mrb[36].mxu0 %v2958_v15 }
0x14d6   :  { %v3121_v55 = vpop.f32.mrb[36].mxu0 }
0x14d7   :  { %3130 = vst [vmem:[%s5470_s14] sm:$0xff] %v3121_v55  ;;  %v3123_v4 = vpop.f32.mrb[37].mxu0 }
0x14d8   :  { %3131 = vst [vmem:[%s5470_s14 + $0x8] sm:$0xff] %v3123_v4  ;;  %v3125_v57 = vpop.f32.mrb[38].mxu0 }
0x14d9   :  { %3132 = vst [vmem:[%s5470_s14 + $0x10] sm:$0xff] %v3125_v57  ;;  %v3127_v41 = vpop.f32.mrb[39].mxu0 }
0x14da   :  { %3133 = vst [vmem:[%s5470_s14 + $0x18] sm:$0xff] %v3127_v41 }
0x14db   :  { %3138 = vsyncpa [#allocation3], 1 }
0x14dc   :  { %3139 = vsyncpa [#allocation5], 1 }

</bundles_post_ra>
